<compile_context>
chip_gen: v5e
topology: v5e:2x2
jax: 0.10.0
libtpu: 0.0.40
codegen_flags: <defaults>
</compile_context>

<pallas_src>
import functools

import jax
import jax.numpy as jnp
from jax.experimental import pallas as pl
from jax.experimental.pallas import tpu as pltpu


def _round_up(x, m):
    return (x + m - 1) // m * m


def _sra_kernel(x_ref, w_ref, b_ref, out_ref, *, dim_head, dp, scale):
    """One fused MXU pass + per-head (128-lane-aligned) sigmoid/product/sum epilogue.

    w_ref/b_ref columns: [q head 0 | ... | q head H-1 | k head 0 | ... | k head H-1],
    each head block padded to `dp` lanes (dp % 128 == 0).
    """
    x = x_ref[...]                                               # (tb, D) bf16
    h = jnp.dot(x, w_ref[...],
                preferred_element_type=jnp.float32) + b_ref[...]  # (tb, 2*H*dp) f32

    H = dim_head
    acc = None
    for hh in range(H):                         # static, lane-aligned slices
        qh = jax.nn.sigmoid(h[:, hh * dp:(hh + 1) * dp])
        kh = jax.nn.sigmoid(h[:, (H + hh) * dp:(H + hh + 1) * dp])
        prod = qh * kh
        acc = prod if acc is None else acc + prod
    # Padded lanes (d >= D) hold 0.5*0.5*H*scale garbage; the wrapper slices them off.
    out_ref[...] = (acc * scale).astype(out_ref.dtype)


def _fold_encoder(params, prefix, *, dim_input, dim_head, dp):
    """Collapse the Identity-activation MLP into one affine map (f32 on host),
    reorder output columns '(d h)' -> '(h d)' and pad each head block from
    dim_input to `dp` lanes.  Valid ONLY because activation=Identity and
    dropout_rate=0 in the module configuration being implemented.
    """
    w = params[f"w{prefix}1"].astype(jnp.float32)
    b = params[f"b{prefix}1"].astype(jnp.float32)
    li = 2
    while f"w{prefix}{li}" in params:
        wl = params[f"w{prefix}{li}"].astype(jnp.float32)
        bl = params[f"b{prefix}{li}"].astype(jnp.float32)
        w = w @ wl
        b = b @ wl + bl
        li += 1

    D, H = dim_input, dim_head
    assert w.shape == (D, D * H), w.shape
    # column j of the encoder output is (d = j // H, h = j % H)
    w = w.reshape(D, D, H).transpose(0, 2, 1)          # (Din, H, D)
    b = b.reshape(1, D, H).transpose(0, 2, 1)          # (1,   H, D)
    w = jnp.pad(w, ((0, 0), (0, 0), (0, dp - D))).reshape(D, H * dp)
    b = jnp.pad(b, ((0, 0), (0, 0), (0, dp - D))).reshape(1, H * dp)
    return w, b


def sra_forward(x, params, *, dim_input, dim_head,
                matmul_dtype=jnp.bfloat16, batch_tile=512):
    """x: (B, dim_input) f32. params: q/k encoder weights (in,out) and biases (1,out).

    Matches the PyTorch module with its default config (activation=Identity,
    dropout_rate=0, s=Identity, no_interaction_indice=None); the host-side
    layer fold depends on that configuration.
    """
    B, D = x.shape
    assert D == dim_input
    H = dim_head
    scale = float(dim_head) ** (-0.5)
    Dp = _round_up(D, 128)                      # lane-aligned head block width

    mm = matmul_dtype
    wq, bq = _fold_encoder(params, "q", dim_input=D, dim_head=H, dp=Dp)
    wk, bk = _fold_encoder(params, "k", dim_input=D, dim_head=H, dp=Dp)
    w_all = jnp.concatenate([wq, wk], axis=1).astype(mm)          # (D, 2*H*Dp)
    b_all = jnp.concatenate([bq, bk], axis=1).astype(jnp.float32)  # (1, 2*H*Dp)

    # ---- generation-aware VMEM budget and batch-tile selection -------------
    try:
        vmem_cap = int(pltpu.get_tpu_info().vmem_capacity_bytes)
    except Exception:
        vmem_cap = 64 * 1024 * 1024             # conservative (v7x) fallback
    budget = int(0.75 * vmem_cap)               # leave headroom for Mosaic scratch

    w_bytes = int(w_all.size) * w_all.dtype.itemsize + int(b_all.size) * 4

    def est_bytes(tb):
        io = 2 * (tb * D * jnp.dtype(mm).itemsize + tb * Dp * 4)   # dbl-buffered x/out
        inter = tb * 2 * H * Dp * 4 + 3 * tb * Dp * 4              # h + qh/kh/acc (f32)
        return io + 2 * w_bytes + inter + (2 << 20)                # + internal scratch

    # Balanced tiles (bounded padding), >=2 grid steps when B allows it (keeps both
    # v7x TensorCores busy), shrink while the VMEM estimate exceeds the budget.
    n_tiles = max(1, pl.cdiv(B, batch_tile))
    if n_tiles == 1 and B > 8:
        n_tiles = 2
    tb = _round_up(pl.cdiv(B, n_tiles), 8)
    while est_bytes(tb) > budget and tb > 8:
        tb = _round_up(tb // 2, 8)
    B_pad = _round_up(B, tb)

    xp = x.astype(mm)
    if B_pad != B:
        xp = jnp.pad(xp, ((0, B_pad - B), (0, 0)))

    grid = (B_pad // tb,)
    kernel = functools.partial(_sra_kernel, dim_head=H, dp=Dp, scale=scale)

    def build(single_buffer_weights):
        opt = {}
        if single_buffer_weights and hasattr(pl, "Buffered"):
            opt = dict(pipeline_mode=pl.Buffered(1))   # resident weights: 1 buffer

        def resident(a):
            return pl.BlockSpec(a.shape, lambda i: (0, 0), **opt)

        return pl.pallas_call(
            kernel,
            out_shape=jax.ShapeDtypeStruct((B_pad, Dp), jnp.float32),
            grid=grid,
            in_specs=[pl.BlockSpec((tb, D), lambda i: (i, 0)),
                      resident(w_all), resident(b_all)],
            out_specs=pl.BlockSpec((tb, Dp), lambda i: (i, 0)),
            compiler_params=pltpu.CompilerParams(
                dimension_semantics=("parallel",),
                vmem_limit_bytes=budget),
        )

    try:
        out = build(True)(xp, w_all, b_all)     # single-buffered resident weights
    except Exception:
        out = build(False)(xp, w_all, b_all)    # fallback: default double-buffering
    # NOTE: for tiny D the f32 Dp-padded writeback is bandwidth-wasteful; packing
    # rows / bf16 output is possible but kept f32 here to preserve module semantics.
    return out[:B, :D]


def init_params(key, dim_input, dim_head=8, n_hidden_encoder=2):
    """Deterministic synthetic parameters matching Vec2matEncoder shapes."""
    dim_out = dim_input * dim_head
    dim_inners = [max(dim_input, dim_out // 2 ** (n_hidden_encoder - i))
                  for i in range(n_hidden_encoder)]
    dims = [dim_input] + dim_inners + [dim_out]   # D -> inner0 -> inner1 -> D*H

    params = {}
    keys = jax.random.split(key, 12)
    ki = 0
    for enc in ("q", "k"):
        for li in range(len(dims) - 1):
            din, dout = dims[li], dims[li + 1]
            w = 0.1 * jax.random.normal(keys[ki], (din, dout), jnp.float32); ki += 1
            b = 0.1 * jax.random.normal(keys[ki], (1, dout), jnp.float32); ki += 1
            params[f"w{enc}{li + 1}"] = w
            params[f"b{enc}{li + 1}"] = b
    return params


def sra_reference(x, params, *, dim_input, dim_head):
    """Plain-JAX f32 reference matching the PyTorch module."""
    scale = float(dim_head) ** (-0.5)

    def enc(prefix):
        h = x @ params[f"w{prefix}1"] + params[f"b{prefix}1"]
        h = h @ params[f"w{prefix}2"] + params[f"b{prefix}2"]
        h = h @ params[f"w{prefix}3"] + params[f"b{prefix}3"]
        h = jax.nn.sigmoid(h)
        return h.reshape(x.shape[0], dim_input, dim_head)

    q = enc("q")
    k = enc("k")
    return (q * k * scale).sum(axis=-1)


if __name__ == "__main__":
    B, D, H = 8, 16, 8       # batch, dim_input, dim_head
    key = jax.random.PRNGKey(0)
    kx, kp = jax.random.split(key)
    x = jax.random.normal(kx, (B, D), jnp.float32)
    params = init_params(kp, D, dim_head=H, n_hidden_encoder=2)

    att = sra_forward(x, params, dim_input=D, dim_head=H)
    att = jax.block_until_ready(att)

    ref = sra_reference(x, params, dim_input=D, dim_head=H)
    assert att.shape == (B, D)
    # bf16 MXU operands -> relaxed tolerance vs the f32 reference.
    assert jnp.allclose(att, ref, atol=1e-2, rtol=1e-2), "mismatch vs reference"

    print("KERNEL_OK")
</pallas_src>

<mosaic_0001>
module attributes {stable_mosaic.version = 11 : i64} {
  func.func @_sra_kernel(%arg0: i32, %arg1: memref<8x16xbf16, #tpu.memory_space<vmem>>, %arg2: memref<16x2048xbf16, #tpu.memory_space<vmem>>, %arg3: memref<1x2048xf32, #tpu.memory_space<vmem>>, %arg4: memref<8x128xf32, #tpu.memory_space<vmem>>) attributes {dimension_semantics = [#tpu.dimension_semantics<parallel>], iteration_bounds = array<i64: 1>, scalar_prefetch = 0 : i64, scratch_operands = 0 : i64, tpu.core_type = #tpu.core_type<tc>, window_params = [{transform_indices = @transform_0, window_bounds = array<i64: 8, 16>}, {pipeline_mode = #tpu.pipeline_mode<synchronous>, transform_indices = @transform_1, window_bounds = array<i64: 16, 2048>}, {pipeline_mode = #tpu.pipeline_mode<synchronous>, transform_indices = @transform_2, window_bounds = array<i64: 1, 2048>}, {transform_indices = @transform_3, window_bounds = array<i64: 8, 128>}]} {
    %c0 = arith.constant 0 : index
    %c0_0 = arith.constant 0 : index
    %0 = vector.load %arg1[%c0, %c0_0] : memref<8x16xbf16, #tpu.memory_space<vmem>>, vector<8x16xbf16>
    %c0_1 = arith.constant 0 : index
    %c0_2 = arith.constant 0 : index
    %1 = vector.load %arg2[%c0_1, %c0_2] : memref<16x2048xbf16, #tpu.memory_space<vmem>>, vector<16x2048xbf16>
    %cst = arith.constant dense<0.000000e+00> : vector<8x2048xf32>
    %2 = tpu.matmul %0, %1, %cst {dimension_numbers = #tpu.dot_dimension_numbers<[1], [0], [0], [1], [0, 0, 1, 1], [], []>} : vector<8x16xbf16>, vector<16x2048xbf16>, vector<8x2048xf32> -> vector<8x2048xf32>
    %c0_3 = arith.constant 0 : index
    %c0_4 = arith.constant 0 : index
    %3 = vector.load %arg3[%c0_3, %c0_4] : memref<1x2048xf32, #tpu.memory_space<vmem>>, vector<1x2048xf32>
    %4 = vector.broadcast %3 : vector<1x2048xf32> to vector<8x2048xf32>
    %5 = arith.addf %2, %4 : vector<8x2048xf32>
    %6 = vector.extract_strided_slice %5 {offsets = [0, 0], sizes = [8, 128], strides = [1, 1]} : vector<8x2048xf32> to vector<8x128xf32>
    %7 = arith.negf %6 : vector<8x128xf32>
    %8 = math.exp %7 : vector<8x128xf32>
    %cst_5 = arith.constant 1.000000e+00 : f32
    %9 = vector.broadcast %cst_5 : f32 to vector<8x128xf32>
    %10 = arith.addf %9, %8 : vector<8x128xf32>
    %11 = arith.divf %9, %10 : vector<8x128xf32>
    %12 = vector.extract_strided_slice %5 {offsets = [0, 1024], sizes = [8, 128], strides = [1, 1]} : vector<8x2048xf32> to vector<8x128xf32>
    %13 = arith.negf %12 : vector<8x128xf32>
    %14 = math.exp %13 : vector<8x128xf32>
    %cst_6 = arith.constant 1.000000e+00 : f32
    %15 = vector.broadcast %cst_6 : f32 to vector<8x128xf32>
    %16 = arith.addf %15, %14 : vector<8x128xf32>
    %17 = arith.divf %15, %16 : vector<8x128xf32>
    %18 = arith.mulf %11, %17 : vector<8x128xf32>
    %19 = vector.extract_strided_slice %5 {offsets = [0, 128], sizes = [8, 128], strides = [1, 1]} : vector<8x2048xf32> to vector<8x128xf32>
    %20 = arith.negf %19 : vector<8x128xf32>
    %21 = math.exp %20 : vector<8x128xf32>
    %cst_7 = arith.constant 1.000000e+00 : f32
    %22 = vector.broadcast %cst_7 : f32 to vector<8x128xf32>
    %23 = arith.addf %22, %21 : vector<8x128xf32>
    %24 = arith.divf %22, %23 : vector<8x128xf32>
    %25 = vector.extract_strided_slice %5 {offsets = [0, 1152], sizes = [8, 128], strides = [1, 1]} : vector<8x2048xf32> to vector<8x128xf32>
    %26 = arith.negf %25 : vector<8x128xf32>
    %27 = math.exp %26 : vector<8x128xf32>
    %cst_8 = arith.constant 1.000000e+00 : f32
    %28 = vector.broadcast %cst_8 : f32 to vector<8x128xf32>
    %29 = arith.addf %28, %27 : vector<8x128xf32>
    %30 = arith.divf %28, %29 : vector<8x128xf32>
    %31 = arith.mulf %24, %30 : vector<8x128xf32>
    %32 = arith.addf %18, %31 : vector<8x128xf32>
    %33 = vector.extract_strided_slice %5 {offsets = [0, 256], sizes = [8, 128], strides = [1, 1]} : vector<8x2048xf32> to vector<8x128xf32>
    %34 = arith.negf %33 : vector<8x128xf32>
    %35 = math.exp %34 : vector<8x128xf32>
    %cst_9 = arith.constant 1.000000e+00 : f32
    %36 = vector.broadcast %cst_9 : f32 to vector<8x128xf32>
    %37 = arith.addf %36, %35 : vector<8x128xf32>
    %38 = arith.divf %36, %37 : vector<8x128xf32>
    %39 = vector.extract_strided_slice %5 {offsets = [0, 1280], sizes = [8, 128], strides = [1, 1]} : vector<8x2048xf32> to vector<8x128xf32>
    %40 = arith.negf %39 : vector<8x128xf32>
    %41 = math.exp %40 : vector<8x128xf32>
    %cst_10 = arith.constant 1.000000e+00 : f32
    %42 = vector.broadcast %cst_10 : f32 to vector<8x128xf32>
    %43 = arith.addf %42, %41 : vector<8x128xf32>
    %44 = arith.divf %42, %43 : vector<8x128xf32>
    %45 = arith.mulf %38, %44 : vector<8x128xf32>
    %46 = arith.addf %32, %45 : vector<8x128xf32>
    %47 = vector.extract_strided_slice %5 {offsets = [0, 384], sizes = [8, 128], strides = [1, 1]} : vector<8x2048xf32> to vector<8x128xf32>
    %48 = arith.negf %47 : vector<8x128xf32>
    %49 = math.exp %48 : vector<8x128xf32>
    %cst_11 = arith.constant 1.000000e+00 : f32
    %50 = vector.broadcast %cst_11 : f32 to vector<8x128xf32>
    %51 = arith.addf %50, %49 : vector<8x128xf32>
    %52 = arith.divf %50, %51 : vector<8x128xf32>
    %53 = vector.extract_strided_slice %5 {offsets = [0, 1408], sizes = [8, 128], strides = [1, 1]} : vector<8x2048xf32> to vector<8x128xf32>
    %54 = arith.negf %53 : vector<8x128xf32>
    %55 = math.exp %54 : vector<8x128xf32>
    %cst_12 = arith.constant 1.000000e+00 : f32
    %56 = vector.broadcast %cst_12 : f32 to vector<8x128xf32>
    %57 = arith.addf %56, %55 : vector<8x128xf32>
    %58 = arith.divf %56, %57 : vector<8x128xf32>
    %59 = arith.mulf %52, %58 : vector<8x128xf32>
    %60 = arith.addf %46, %59 : vector<8x128xf32>
    %61 = vector.extract_strided_slice %5 {offsets = [0, 512], sizes = [8, 128], strides = [1, 1]} : vector<8x2048xf32> to vector<8x128xf32>
    %62 = arith.negf %61 : vector<8x128xf32>
    %63 = math.exp %62 : vector<8x128xf32>
    %cst_13 = arith.constant 1.000000e+00 : f32
    %64 = vector.broadcast %cst_13 : f32 to vector<8x128xf32>
    %65 = arith.addf %64, %63 : vector<8x128xf32>
    %66 = arith.divf %64, %65 : vector<8x128xf32>
    %67 = vector.extract_strided_slice %5 {offsets = [0, 1536], sizes = [8, 128], strides = [1, 1]} : vector<8x2048xf32> to vector<8x128xf32>
    %68 = arith.negf %67 : vector<8x128xf32>
    %69 = math.exp %68 : vector<8x128xf32>
    %cst_14 = arith.constant 1.000000e+00 : f32
    %70 = vector.broadcast %cst_14 : f32 to vector<8x128xf32>
    %71 = arith.addf %70, %69 : vector<8x128xf32>
    %72 = arith.divf %70, %71 : vector<8x128xf32>
    %73 = arith.mulf %66, %72 : vector<8x128xf32>
    %74 = arith.addf %60, %73 : vector<8x128xf32>
    %75 = vector.extract_strided_slice %5 {offsets = [0, 640], sizes = [8, 128], strides = [1, 1]} : vector<8x2048xf32> to vector<8x128xf32>
    %76 = arith.negf %75 : vector<8x128xf32>
    %77 = math.exp %76 : vector<8x128xf32>
    %cst_15 = arith.constant 1.000000e+00 : f32
    %78 = vector.broadcast %cst_15 : f32 to vector<8x128xf32>
    %79 = arith.addf %78, %77 : vector<8x128xf32>
    %80 = arith.divf %78, %79 : vector<8x128xf32>
    %81 = vector.extract_strided_slice %5 {offsets = [0, 1664], sizes = [8, 128], strides = [1, 1]} : vector<8x2048xf32> to vector<8x128xf32>
    %82 = arith.negf %81 : vector<8x128xf32>
    %83 = math.exp %82 : vector<8x128xf32>
    %cst_16 = arith.constant 1.000000e+00 : f32
    %84 = vector.broadcast %cst_16 : f32 to vector<8x128xf32>
    %85 = arith.addf %84, %83 : vector<8x128xf32>
    %86 = arith.divf %84, %85 : vector<8x128xf32>
    %87 = arith.mulf %80, %86 : vector<8x128xf32>
    %88 = arith.addf %74, %87 : vector<8x128xf32>
    %89 = vector.extract_strided_slice %5 {offsets = [0, 768], sizes = [8, 128], strides = [1, 1]} : vector<8x2048xf32> to vector<8x128xf32>
    %90 = arith.negf %89 : vector<8x128xf32>
    %91 = math.exp %90 : vector<8x128xf32>
    %cst_17 = arith.constant 1.000000e+00 : f32
    %92 = vector.broadcast %cst_17 : f32 to vector<8x128xf32>
    %93 = arith.addf %92, %91 : vector<8x128xf32>
    %94 = arith.divf %92, %93 : vector<8x128xf32>
    %95 = vector.extract_strided_slice %5 {offsets = [0, 1792], sizes = [8, 128], strides = [1, 1]} : vector<8x2048xf32> to vector<8x128xf32>
    %96 = arith.negf %95 : vector<8x128xf32>
    %97 = math.exp %96 : vector<8x128xf32>
    %cst_18 = arith.constant 1.000000e+00 : f32
    %98 = vector.broadcast %cst_18 : f32 to vector<8x128xf32>
    %99 = arith.addf %98, %97 : vector<8x128xf32>
    %100 = arith.divf %98, %99 : vector<8x128xf32>
    %101 = arith.mulf %94, %100 : vector<8x128xf32>
    %102 = arith.addf %88, %101 : vector<8x128xf32>
    %103 = vector.extract_strided_slice %5 {offsets = [0, 896], sizes = [8, 128], strides = [1, 1]} : vector<8x2048xf32> to vector<8x128xf32>
    %104 = arith.negf %103 : vector<8x128xf32>
    %105 = math.exp %104 : vector<8x128xf32>
    %cst_19 = arith.constant 1.000000e+00 : f32
    %106 = vector.broadcast %cst_19 : f32 to vector<8x128xf32>
    %107 = arith.addf %106, %105 : vector<8x128xf32>
    %108 = arith.divf %106, %107 : vector<8x128xf32>
    %109 = vector.extract_strided_slice %5 {offsets = [0, 1920], sizes = [8, 128], strides = [1, 1]} : vector<8x2048xf32> to vector<8x128xf32>
    %110 = arith.negf %109 : vector<8x128xf32>
    %111 = math.exp %110 : vector<8x128xf32>
    %cst_20 = arith.constant 1.000000e+00 : f32
    %112 = vector.broadcast %cst_20 : f32 to vector<8x128xf32>
    %113 = arith.addf %112, %111 : vector<8x128xf32>
    %114 = arith.divf %112, %113 : vector<8x128xf32>
    %115 = arith.mulf %108, %114 : vector<8x128xf32>
    %116 = arith.addf %102, %115 : vector<8x128xf32>
    %cst_21 = arith.constant 0.353553385 : f32
    %117 = vector.broadcast %cst_21 : f32 to vector<8x128xf32>
    %118 = arith.mulf %116, %117 : vector<8x128xf32>
    %c0_22 = arith.constant 0 : index
    %c0_23 = arith.constant 0 : index
    %119 = vector.load %arg4[%c0_22, %c0_23] : memref<8x128xf32, #tpu.memory_space<vmem>>, vector<8x128xf32>
    tpu.vector_store %arg4[%c0_22, %c0_23], %118 {strides = array<i32>} : memref<8x128xf32, #tpu.memory_space<vmem>>, vector<8x128xf32>,
    return
  }
  func.func @transform_0(%arg0: i32) -> (i32, i32) {
    %c0_i32 = arith.constant 0 : i32
    %c0_i32_0 = arith.constant 0 : i32
    return %arg0, %c0_i32 : i32, i32
  }
  func.func @transform_1(%arg0: i32) -> (i32, i32) {
    %c0_i32 = arith.constant 0 : i32
    %c0_i32_0 = arith.constant 0 : i32
    %c0_i32_1 = arith.constant 0 : i32
    return %c0_i32, %c0_i32_0 : i32, i32
  }
  func.func @transform_2(%arg0: i32) -> (i32, i32) {
    %c0_i32 = arith.constant 0 : i32
    %c0_i32_0 = arith.constant 0 : i32
    %c0_i32_1 = arith.constant 0 : i32
    return %c0_i32, %c0_i32_0 : i32, i32
  }
  func.func @transform_3(%arg0: i32) -> (i32, i32) {
    %c0_i32 = arith.constant 0 : i32
    %c0_i32_0 = arith.constant 0 : i32
    return %arg0, %c0_i32 : i32, i32
  }
}

module attributes {stable_mosaic.version = 11 : i64} {
  func.func @_sra_kernel(%arg0: i32, %arg1: memref<8x16xbf16, #tpu.memory_space<vmem>>, %arg2: memref<16x2048xbf16, #tpu.memory_space<vmem>>, %arg3: memref<1x2048xf32, #tpu.memory_space<vmem>>, %arg4: memref<8x128xf32, #tpu.memory_space<vmem>>) attributes {dimension_semantics = [#tpu.dimension_semantics<parallel>], iteration_bounds = array<i64: 1>, scalar_prefetch = 0 : i64, scratch_operands = 0 : i64, tpu.core_type = #tpu.core_type<tc>, window_params = [{transform_indices = @transform_0, window_bounds = array<i64: 8, 16>}, {pipeline_mode = #tpu.pipeline_mode<synchronous>, transform_indices = @transform_1, window_bounds = array<i64: 16, 2048>}, {pipeline_mode = #tpu.pipeline_mode<synchronous>, transform_indices = @transform_2, window_bounds = array<i64: 1, 2048>}, {transform_indices = @transform_3, window_bounds = array<i64: 8, 128>}]} {
    %c0 = arith.constant 0 : index
    %c0_0 = arith.constant 0 : index
    %0 = vector.load %arg1[%c0, %c0_0] : memref<8x16xbf16, #tpu.memory_space<vmem>>, vector<8x16xbf16>
    %c0_1 = arith.constant 0 : index
    %c0_2 = arith.constant 0 : index
    %1 = vector.load %arg2[%c0_1, %c0_2] : memref<16x2048xbf16, #tpu.memory_space<vmem>>, vector<16x2048xbf16>
    %cst = arith.constant dense<0.000000e+00> : vector<8x2048xf32>
    %2 = tpu.matmul %0, %1, %cst {dimension_numbers = #tpu.dot_dimension_numbers<[1], [0], [0], [1], [0, 0, 1, 1], [], []>} : vector<8x16xbf16>, vector<16x2048xbf16>, vector<8x2048xf32> -> vector<8x2048xf32>
    %c0_3 = arith.constant 0 : index
    %c0_4 = arith.constant 0 : index
    %3 = vector.load %arg3[%c0_3, %c0_4] : memref<1x2048xf32, #tpu.memory_space<vmem>>, vector<1x2048xf32>
    %4 = vector.broadcast %3 : vector<1x2048xf32> to vector<8x2048xf32>
    %5 = arith.addf %2, %4 : vector<8x2048xf32>
    %6 = vector.extract_strided_slice %5 {offsets = [0, 0], sizes = [8, 128], strides = [1, 1]} : vector<8x2048xf32> to vector<8x128xf32>
    %7 = arith.negf %6 : vector<8x128xf32>
    %8 = math.exp %7 : vector<8x128xf32>
    %cst_5 = arith.constant 1.000000e+00 : f32
    %9 = vector.broadcast %cst_5 : f32 to vector<8x128xf32>
    %10 = arith.addf %9, %8 : vector<8x128xf32>
    %11 = arith.divf %9, %10 : vector<8x128xf32>
    %12 = vector.extract_strided_slice %5 {offsets = [0, 1024], sizes = [8, 128], strides = [1, 1]} : vector<8x2048xf32> to vector<8x128xf32>
    %13 = arith.negf %12 : vector<8x128xf32>
    %14 = math.exp %13 : vector<8x128xf32>
    %cst_6 = arith.constant 1.000000e+00 : f32
    %15 = vector.broadcast %cst_6 : f32 to vector<8x128xf32>
    %16 = arith.addf %15, %14 : vector<8x128xf32>
    %17 = arith.divf %15, %16 : vector<8x128xf32>
    %18 = arith.mulf %11, %17 : vector<8x128xf32>
    %19 = vector.extract_strided_slice %5 {offsets = [0, 128], sizes = [8, 128], strides = [1, 1]} : vector<8x2048xf32> to vector<8x128xf32>
    %20 = arith.negf %19 : vector<8x128xf32>
    %21 = math.exp %20 : vector<8x128xf32>
    %cst_7 = arith.constant 1.000000e+00 : f32
    %22 = vector.broadcast %cst_7 : f32 to vector<8x128xf32>
    %23 = arith.addf %22, %21 : vector<8x128xf32>
    %24 = arith.divf %22, %23 : vector<8x128xf32>
    %25 = vector.extract_strided_slice %5 {offsets = [0, 1152], sizes = [8, 128], strides = [1, 1]} : vector<8x2048xf32> to vector<8x128xf32>
    %26 = arith.negf %25 : vector<8x128xf32>
    %27 = math.exp %26 : vector<8x128xf32>
    %cst_8 = arith.constant 1.000000e+00 : f32
    %28 = vector.broadcast %cst_8 : f32 to vector<8x128xf32>
    %29 = arith.addf %28, %27 : vector<8x128xf32>
    %30 = arith.divf %28, %29 : vector<8x128xf32>
    %31 = arith.mulf %24, %30 : vector<8x128xf32>
    %32 = arith.addf %18, %31 : vector<8x128xf32>
    %33 = vector.extract_strided_slice %5 {offsets = [0, 256], sizes = [8, 128], strides = [1, 1]} : vector<8x2048xf32> to vector<8x128xf32>
    %34 = arith.negf %33 : vector<8x128xf32>
    %35 = math.exp %34 : vector<8x128xf32>
    %cst_9 = arith.constant 1.000000e+00 : f32
    %36 = vector.broadcast %cst_9 : f32 to vector<8x128xf32>
    %37 = arith.addf %36, %35 : vector<8x128xf32>
    %38 = arith.divf %36, %37 : vector<8x128xf32>
    %39 = vector.extract_strided_slice %5 {offsets = [0, 1280], sizes = [8, 128], strides = [1, 1]} : vector<8x2048xf32> to vector<8x128xf32>
    %40 = arith.negf %39 : vector<8x128xf32>
    %41 = math.exp %40 : vector<8x128xf32>
    %cst_10 = arith.constant 1.000000e+00 : f32
    %42 = vector.broadcast %cst_10 : f32 to vector<8x128xf32>
    %43 = arith.addf %42, %41 : vector<8x128xf32>
    %44 = arith.divf %42, %43 : vector<8x128xf32>
    %45 = arith.mulf %38, %44 : vector<8x128xf32>
    %46 = arith.addf %32, %45 : vector<8x128xf32>
    %47 = vector.extract_strided_slice %5 {offsets = [0, 384], sizes = [8, 128], strides = [1, 1]} : vector<8x2048xf32> to vector<8x128xf32>
    %48 = arith.negf %47 : vector<8x128xf32>
    %49 = math.exp %48 : vector<8x128xf32>
    %cst_11 = arith.constant 1.000000e+00 : f32
    %50 = vector.broadcast %cst_11 : f32 to vector<8x128xf32>
    %51 = arith.addf %50, %49 : vector<8x128xf32>
    %52 = arith.divf %50, %51 : vector<8x128xf32>
    %53 = vector.extract_strided_slice %5 {offsets = [0, 1408], sizes = [8, 128], strides = [1, 1]} : vector<8x2048xf32> to vector<8x128xf32>
    %54 = arith.negf %53 : vector<8x128xf32>
    %55 = math.exp %54 : vector<8x128xf32>
    %cst_12 = arith.constant 1.000000e+00 : f32
    %56 = vector.broadcast %cst_12 : f32 to vector<8x128xf32>
    %57 = arith.addf %56, %55 : vector<8x128xf32>
    %58 = arith.divf %56, %57 : vector<8x128xf32>
    %59 = arith.mulf %52, %58 : vector<8x128xf32>
    %60 = arith.addf %46, %59 : vector<8x128xf32>
    %61 = vector.extract_strided_slice %5 {offsets = [0, 512], sizes = [8, 128], strides = [1, 1]} : vector<8x2048xf32> to vector<8x128xf32>
    %62 = arith.negf %61 : vector<8x128xf32>
    %63 = math.exp %62 : vector<8x128xf32>
    %cst_13 = arith.constant 1.000000e+00 : f32
    %64 = vector.broadcast %cst_13 : f32 to vector<8x128xf32>
    %65 = arith.addf %64, %63 : vector<8x128xf32>
    %66 = arith.divf %64, %65 : vector<8x128xf32>
    %67 = vector.extract_strided_slice %5 {offsets = [0, 1536], sizes = [8, 128], strides = [1, 1]} : vector<8x2048xf32> to vector<8x128xf32>
    %68 = arith.negf %67 : vector<8x128xf32>
    %69 = math.exp %68 : vector<8x128xf32>
    %cst_14 = arith.constant 1.000000e+00 : f32
    %70 = vector.broadcast %cst_14 : f32 to vector<8x128xf32>
    %71 = arith.addf %70, %69 : vector<8x128xf32>
    %72 = arith.divf %70, %71 : vector<8x128xf32>
    %73 = arith.mulf %66, %72 : vector<8x128xf32>
    %74 = arith.addf %60, %73 : vector<8x128xf32>
    %75 = vector.extract_strided_slice %5 {offsets = [0, 640], sizes = [8, 128], strides = [1, 1]} : vector<8x2048xf32> to vector<8x128xf32>
    %76 = arith.negf %75 : vector<8x128xf32>
    %77 = math.exp %76 : vector<8x128xf32>
    %cst_15 = arith.constant 1.000000e+00 : f32
    %78 = vector.broadcast %cst_15 : f32 to vector<8x128xf32>
    %79 = arith.addf %78, %77 : vector<8x128xf32>
    %80 = arith.divf %78, %79 : vector<8x128xf32>
    %81 = vector.extract_strided_slice %5 {offsets = [0, 1664], sizes = [8, 128], strides = [1, 1]} : vector<8x2048xf32> to vector<8x128xf32>
    %82 = arith.negf %81 : vector<8x128xf32>
    %83 = math.exp %82 : vector<8x128xf32>
    %cst_16 = arith.constant 1.000000e+00 : f32
    %84 = vector.broadcast %cst_16 : f32 to vector<8x128xf32>
    %85 = arith.addf %84, %83 : vector<8x128xf32>
    %86 = arith.divf %84, %85 : vector<8x128xf32>
    %87 = arith.mulf %80, %86 : vector<8x128xf32>
    %88 = arith.addf %74, %87 : vector<8x128xf32>
    %89 = vector.extract_strided_slice %5 {offsets = [0, 768], sizes = [8, 128], strides = [1, 1]} : vector<8x2048xf32> to vector<8x128xf32>
    %90 = arith.negf %89 : vector<8x128xf32>
    %91 = math.exp %90 : vector<8x128xf32>
    %cst_17 = arith.constant 1.000000e+00 : f32
    %92 = vector.broadcast %cst_17 : f32 to vector<8x128xf32>
    %93 = arith.addf %92, %91 : vector<8x128xf32>
    %94 = arith.divf %92, %93 : vector<8x128xf32>
    %95 = vector.extract_strided_slice %5 {offsets = [0, 1792], sizes = [8, 128], strides = [1, 1]} : vector<8x2048xf32> to vector<8x128xf32>
    %96 = arith.negf %95 : vector<8x128xf32>
    %97 = math.exp %96 : vector<8x128xf32>
    %cst_18 = arith.constant 1.000000e+00 : f32
    %98 = vector.broadcast %cst_18 : f32 to vector<8x128xf32>
    %99 = arith.addf %98, %97 : vector<8x128xf32>
    %100 = arith.divf %98, %99 : vector<8x128xf32>
    %101 = arith.mulf %94, %100 : vector<8x128xf32>
    %102 = arith.addf %88, %101 : vector<8x128xf32>
    %103 = vector.extract_strided_slice %5 {offsets = [0, 896], sizes = [8, 128], strides = [1, 1]} : vector<8x2048xf32> to vector<8x128xf32>
    %104 = arith.negf %103 : vector<8x128xf32>
    %105 = math.exp %104 : vector<8x128xf32>
    %cst_19 = arith.constant 1.000000e+00 : f32
    %106 = vector.broadcast %cst_19 : f32 to vector<8x128xf32>
    %107 = arith.addf %106, %105 : vector<8x128xf32>
    %108 = arith.divf %106, %107 : vector<8x128xf32>
    %109 = vector.extract_strided_slice %5 {offsets = [0, 1920], sizes = [8, 128], strides = [1, 1]} : vector<8x2048xf32> to vector<8x128xf32>
    %110 = arith.negf %109 : vector<8x128xf32>
    %111 = math.exp %110 : vector<8x128xf32>
    %cst_20 = arith.constant 1.000000e+00 : f32
    %112 = vector.broadcast %cst_20 : f32 to vector<8x128xf32>
    %113 = arith.addf %112, %111 : vector<8x128xf32>
    %114 = arith.divf %112, %113 : vector<8x128xf32>
    %115 = arith.mulf %108, %114 : vector<8x128xf32>
    %116 = arith.addf %102, %115 : vector<8x128xf32>
    %cst_21 = arith.constant 0.353553385 : f32
    %117 = vector.broadcast %cst_21 : f32 to vector<8x128xf32>
    %118 = arith.mulf %116, %117 : vector<8x128xf32>
    %c0_22 = arith.constant 0 : index
    %c0_23 = arith.constant 0 : index
    %119 = vector.load %arg4[%c0_22, %c0_23] : memref<8x128xf32, #tpu.memory_space<vmem>>, vector<8x128xf32>
    tpu.vector_store %arg4[%c0_22, %c0_23], %118 {strides = array<i32>} : memref<8x128xf32, #tpu.memory_space<vmem>>, vector<8x128xf32>,
    return
  }
  func.func @transform_0(%arg0: i32) -> (i32, i32) {
    %c0_i32 = arith.constant 0 : i32
    %c0_i32_0 = arith.constant 0 : i32
    return %arg0, %c0_i32 : i32, i32
  }
  func.func @transform_1(%arg0: i32) -> (i32, i32) {
    %c0_i32 = arith.constant 0 : i32
    %c0_i32_0 = arith.constant 0 : i32
    %c0_i32_1 = arith.constant 0 : i32
    return %c0_i32, %c0_i32_0 : i32, i32
  }
  func.func @transform_2(%arg0: i32) -> (i32, i32) {
    %c0_i32 = arith.constant 0 : i32
    %c0_i32_0 = arith.constant 0 : i32
    %c0_i32_1 = arith.constant 0 : i32
    return %c0_i32, %c0_i32_0 : i32, i32
  }
  func.func @transform_3(%arg0: i32) -> (i32, i32) {
    %c0_i32 = arith.constant 0 : i32
    %c0_i32_0 = arith.constant 0 : i32
    return %arg0, %c0_i32 : i32, i32
  }
}

</mosaic_0001>

<bundles_post_ra>
// kernel: tpu_custom_call.1
= control target key start
LH: loop header
LB: loop body
LE: loop exit
PB: predicated region body
PF: predicated region fallthrough
CT: control target
= control target key end

     0   :  { %8 = vsyncpa [#allocation3], 0  ;;  %s1521_s0 = inlined_call_operand.hbm [shape: bf16[8,16], index: 0, kind: input, shape index: {}]   ;;  %s1522_s1 = inlined_call_operand.hbm [shape: bf16[16,2048], index: 1, kind: input, shape index: {}]   ;;  %s1523_s2 = inlined_call_operand.hbm [shape: f32[1,2048], index: 2, kind: input, shape index: {}]   ;;  %s1524_s3 = inlined_call_operand.hbm [shape: f32[8,128], index: 3, kind: output, shape index: {}]  }
   0x1   :  { %9 = vsyncpa [#allocation6], 0  ;;  %s26_s14 = sshll.u32 %s1522_s1, 4  ;;  %s27_s14 = int_to_ptr.hbm [resolvable:$true] %s26_s14 }
   0x2   :  { %10 = vsyncpa [#allocation4], 0  ;;  %s1027_s15 = smov [#allocation5]   ;;  %s16_s19 = sshll.u32 %s1521_s0, 4  ;;  %s17_s19 = int_to_ptr.hbm [resolvable:$true] %s16_s19 }
   0x3   :  { %s28_s16 = sshll.u32 %s1027_s15, 4  ;;  %s1028_s20 = smov 1024   ;;  %s29_s16 = int_to_ptr.vmem [resolvable:$true] %s28_s16 }
   0x4   :  { %s1029_s21 = smov 64   ;;  %s1030_s22 = smov [#allocation2]  }
   0x5   :  { %34 = dma.hbm_to_vmem [thread:$0]  %s27_s14, 2048, %s29_s16, [#allocation6], %s1028_s20, %s1028_s20, %s1029_s21  }
   0x6   :  { %s18_s23 = sshll.u32 %s1030_s22, 4  ;;  %s40_s26 = sshll.u32 %s1523_s2, 4  ;;  %s19_s23 = int_to_ptr.vmem [resolvable:$true] %s18_s23  ;;  %s41_s26 = int_to_ptr.hbm [resolvable:$true] %s40_s26 }
   0x7   :  { %21 = dma.hbm_to_vmem [thread:$0]  %s17_s19, 64, %s19_s23, [#allocation3]  }
   0x8   :  { %s1031_s1 = smov [#allocation7]  }
   0x9   :  { %s42_s27 = sshll.u32 %s1031_s1, 4  ;;  %s43_s27 = int_to_ptr.vmem [resolvable:$true] %s42_s27 }
   0xa   :  { %45 = dma.hbm_to_vmem [thread:$0]  %s41_s26, 256, %s43_s27, [#allocation6]  }
   0xb   :  { %1021 = dma.done.wait [#allocation3], 64  }
   0xc   :  { %1022 = vsyncadd [#allocation3], 4294967232 }
   0xd   :  { %1023 = dma.done.wait [#allocation6], 2304  }
   0xe   :  { %1024 = vsyncadd [#allocation6], 4294964992  ;;  %vm192_vm0 = vcmask 130048   ;;  %v745_v0 = vld [vmem:[#allocation5] sm:$0xf]  ;;  %s1032_s0 = smov [#allocation8]  }
   0xf   :  { %v847_v1 = vld [vmem:[#allocation5 + $0x3c] sm:$0xf0]  ;;  %v839_v2 = vld [vmem:[#allocation5 + $0x4] sm:$0xf]  ;;  %v753_v5 = vld [vmem:[#allocation5 + $0x8] sm:$0xf] }
  0x10   :  { %v746_v3 = vor.u32 %v847_v1, %v745_v0  ;;  %v747_v4 = vld [vmem:[#allocation5 + $0x40] sm:$0xf0]  ;;  %v848_v6 = vld [vmem:[#allocation5 + $0x44] sm:$0xf0]  ;;  %v840_v9 = vld [vmem:[#allocation5 + $0xc] sm:$0xf] }
  0x11   :  { %v750_v7 = vor.u32 %v839_v2, %v747_v4  ;;  %v754_v8 = vor.u32 %v848_v6, %v753_v5  ;;  %v755_v10 = vld [vmem:[#allocation5 + $0x48] sm:$0xf0]  ;;  %v1062_v11 = vld [vmem:[#allocation2] sm:$0xf]  ;;  %v769_v13 = vld [vmem:[#allocation5 + $0x18] sm:$0xf] }
  0x12   :  { %203 = vmatpush.bf16.msra.mxu0 %v746_v3  ;;  %v758_v12 = vor.u32 %v840_v9, %v755_v10  ;;  %v850_v14 = vld [vmem:[#allocation5 + $0x54] sm:$0xf0]  ;;  %v761_v15 = vld [vmem:[#allocation5 + $0x10] sm:$0xf]  ;;  %v842_v18 = vld [vmem:[#allocation5 + $0x1c] sm:$0xf] }
  0x13   :  { %216 = vmatpush.bf16.msra.mxu1 %v750_v7  ;;  %229 = vmatpush.bf16.msra.mxu2 %v754_v8  ;;  %v770_v16 = vor.u32 %v850_v14, %v769_v13  ;;  %v849_v17 = vld [vmem:[#allocation5 + $0x4c] sm:$0xf0]  ;;  %v771_v19 = vld [vmem:[#allocation5 + $0x58] sm:$0xf0]  ;;  %v841_v22 = vld [vmem:[#allocation5 + $0x14] sm:$0xf] }
  0x14   :  { %242 = vmatpush.bf16.msra.mxu3 %v758_v12  ;;  %v762_v20 = vor.u32 %v849_v17, %v761_v15  ;;  %v774_v21 = vor.u32 %v842_v18, %v771_v19  ;;  %v763_v23 = vld [vmem:[#allocation5 + $0x50] sm:$0xf0]  ;;  %v785_v24 = vld [vmem:[#allocation5 + $0x28] sm:$0xf]  ;;  %v777_v27 = vld [vmem:[#allocation5 + $0x20] sm:$0xf] }
  0x15   :  { %807 = vmatmul.msk.bf16.vlgmr.msra.gmra.mxu0 %vm192_vm0, %v1062_v11  ;;  %v766_v25 = vor.u32 %v841_v22, %v763_v23  ;;  %v852_v26 = vld [vmem:[#allocation5 + $0x64] sm:$0xf0]  ;;  %v851_v28 = vld [vmem:[#allocation5 + $0x5c] sm:$0xf0]  ;;  %v844_v31 = vld [vmem:[#allocation5 + $0x2c] sm:$0xf] }
  0x16   :  { %808 = vmatmul.msk.bf16.vlgmr.msra.gmra.mxu1 %vm192_vm0, %v1062_v11  ;;  %809 = vmatmul.msk.bf16.vlgmr.msra.gmra.mxu2 %vm192_vm0, %v1062_v11  ;;  %v786_v29 = vor.u32 %v852_v26, %v785_v24  ;;  %v778_v30 = vor.u32 %v851_v28, %v777_v27  ;;  %v787_v32 = vld [vmem:[#allocation5 + $0x68] sm:$0xf0]  ;;  %v843_v33 = vld [vmem:[#allocation5 + $0x24] sm:$0xf]  ;;  %v801_v37 = vld [vmem:[#allocation5 + $0x38] sm:$0xf] }
  0x17   :  { %281 = vmatpush.bf16.msrb.mxu2 %v770_v16  ;;  %810 = vmatmul.msk.bf16.vlgmr.msra.gmra.mxu3 %vm192_vm0, %v1062_v11  ;;  %v790_v34 = vor.u32 %v844_v31, %v787_v32  ;;  %v779_v35 = vld [vmem:[#allocation5 + $0x60] sm:$0xf0]  ;;  %v854_v38 = vld [vmem:[#allocation5 + $0x74] sm:$0xf0]  ;;  %v793_v39 = vld [vmem:[#allocation5 + $0x30] sm:$0xf] }
  0x18   :  { %255 = vmatpush.bf16.msrb.mxu0 %v762_v20  ;;  %294 = vmatpush.bf16.msrb.mxu3 %v774_v21  ;;  %v782_v36 = vor.u32 %v843_v33, %v779_v35  ;;  %v853_v40 = vld [vmem:[#allocation5 + $0x6c] sm:$0xf0]  ;;  %v846_v41 = vld [vmem:[#allocation5 + $0x3c] sm:$0xf]  ;;  %v845_v43 = vld [vmem:[#allocation5 + $0x34] sm:$0xf]  ;;  %v802_v45 = vor.u32 %v854_v38, %v801_v37 }
  0x19   :  { %268 = vmatpush.bf16.msrb.mxu1 %v766_v25  ;;  %v803_v42 = vld [vmem:[#allocation5 + $0x78] sm:$0xf0]  ;;  %v795_v44 = vld [vmem:[#allocation5 + $0x70] sm:$0xf0]  ;;  %v794_v46 = vor.u32 %v853_v40, %v793_v39  ;;  %v76_v49 = vld [vmem:[#allocation7] sm:$0xff]  ;;  %s730_s2 = sshll.u32 %s1032_s0, 4  ;;  %s731_s2 = int_to_ptr.vmem [resolvable:$true] %s730_s2 }
  0x1a   :  { %v806_v47 = vor.u32 %v846_v41, %v803_v42  ;;  %v798_v48 = vor.u32 %v845_v43, %v795_v44  ;;  %v80_v50 = vperm.slane %v76_v49, 0  ;;  %v81_v51 = vperm.slane %v76_v49, 1  ;;  %v1112_v32 = vld [vmem:[#allocation7 + $0x8] sm:$0xff]  ;;  %s732_s30 = sshll.u32 %s1524_s3, 4  ;;  %s733_s30 = int_to_ptr.hbm [resolvable:$true] %s732_s30 }
  0x1b   :  { %333 = vmatpush.bf16.msra.mxu2 %v786_v29  ;;  %v82_v58 = vperm.slane %v76_v49, 2  ;;  %v83_v59 = vperm.slane %v76_v49, 3  ;;  %v84_v6 = vperm.slane %v76_v49, 4  ;;  %v85_v8 = vperm.slane %v76_v49, 5 }
  0x1c   :  { %307 = vmatpush.bf16.msra.mxu0 %v778_v30  ;;  %346 = vmatpush.bf16.msra.mxu3 %v790_v34  ;;  %v86_v21 = vperm.slane %v76_v49, 6  ;;  %v87_v23 = vperm.slane %v76_v49, 7  ;;  %v88_v39 = vperm.slane %v1112_v32, 0  ;;  %v89_v41 = vperm.slane %v1112_v32, 1 }
  0x1d   :  { %320 = vmatpush.bf16.msra.mxu1 %v782_v36 }
  0x25   :  { %811 = vmatmul.msk.bf16.vlgmr.msrb.gmra.mxu0 %vm192_vm0, %v1062_v11 }
  0x26   :  { %812 = vmatmul.msk.bf16.vlgmr.msrb.gmra.mxu1 %vm192_vm0, %v1062_v11  ;;  %813 = vmatmul.msk.bf16.vlgmr.msrb.gmra.mxu2 %vm192_vm0, %v1062_v11 }
  0x27   :  { %814 = vmatmul.msk.bf16.vlgmr.msrb.gmra.mxu3 %vm192_vm0, %v1062_v11  ;;  %385 = vmatpush.bf16.msrb.mxu2 %v802_v45 }
  0x28   :  { %359 = vmatpush.bf16.msrb.mxu0 %v794_v46  ;;  %398 = vmatpush.bf16.msrb.mxu3 %v806_v47  ;;  %v90_v47 = vperm.slane %v1112_v32, 2 }
  0x29   :  { %372 = vmatpush.bf16.msrb.mxu1 %v798_v48 }
  0x35   :  { %815 = vmatmul.msk.bf16.vlgmr.msra.gmra.mxu0 %vm192_vm0, %v1062_v11 }
  0x36   :  { %816 = vmatmul.msk.bf16.vlgmr.msra.gmra.mxu1 %vm192_vm0, %v1062_v11  ;;  %817 = vmatmul.msk.bf16.vlgmr.msra.gmra.mxu2 %vm192_vm0, %v1062_v11 }
  0x37   :  { %818 = vmatmul.msk.bf16.vlgmr.msra.gmra.mxu3 %vm192_vm0, %v1062_v11 }
  0x45   :  { %819 = vmatmul.msk.bf16.vlgmr.msrb.gmra.mxu0 %vm192_vm0, %v1062_v11 }
  0x46   :  { %820 = vmatmul.msk.bf16.vlgmr.msrb.gmra.mxu1 %vm192_vm0, %v1062_v11  ;;  %821 = vmatmul.msk.bf16.vlgmr.msrb.gmra.mxu2 %vm192_vm0, %v1062_v11 }
  0x47   :  { %822 = vmatmul.msk.bf16.vlgmr.msrb.gmra.mxu3 %vm192_vm0, %v1062_v11 }
  0x92   :  { %v205_v52 = vpop.f32.mrf.mxu0 }
  0x93   :  { %v206_v53 = vadd.f32 %v205_v52, %v80_v50  ;;  %v218_v54 = vpop.f32.mrf.mxu1 }
  0x94   :  { %v219_v55 = vadd.f32 %v218_v54, %v81_v51 }
  0x95   :  { %v823_v56 = vmul.f32 -1.442695, %v206_v53 }
  0x96   :  { %v825_v57 = vmul.f32 -1.442695, %v219_v55 }
  0x97   :  { %861 = vpow2.f32 %v823_v56 }
  0x98   :  { %863 = vpow2.f32 %v825_v57  ;;  %v91_v57 = vperm.slane %v1112_v32, 3 }
  0x99   :  { %v231_v60 = vpop.f32.mrf.mxu2 }
  0x9a   :  { %v232_v61 = vadd.f32 %v231_v60, %v82_v58  ;;  %v244_v62 = vpop.f32.mrf.mxu3  ;;  %v207_v63 = vpop.f32.mrf.mxu0 }
  0x9b   :  { %v245_v0 = vadd.f32 %v244_v62, %v83_v59  ;;  %v220_v1 = vpop.f32.mrf.mxu1 }
  0x9c   :  { %v827_v2 = vmul.f32 -1.442695, %v232_v61 }
  0x9d   :  { %v862_v3 = vpop.eup %861  ;;  %v829_v4 = vmul.f32 -1.442695, %v245_v0 }
  0x9e   :  { %v864_v5 = vpop.eup %863  ;;  %865 = vpow2.f32 %v827_v2  ;;  %v1096_v7 = vadd.f32 1.0, %v862_v3 }
  0x9f   :  { %867 = vpow2.f32 %v829_v4  ;;  %v1098_v9 = vadd.f32 1.0, %v864_v5 }
  0xa0   :  { %869 = vrcp.f32 %v1096_v7  ;;  %v419_v44 = vand.u32 2147483648, %v1096_v7  ;;  %vm413_vm1 = vweird.f32 %v1096_v7  ;;  %v417_v54 = vand.u32 2147483647, %v1096_v7 }
  0xa1   :  { %v233_v10 = vpop.f32.mrf.mxu2  ;;  %871 = vrcp.f32 %v1098_v9  ;;  %v458_v45 = vand.u32 2147483648, %v1098_v9  ;;  %vm452_vm2 = vweird.f32 %v1098_v9  ;;  %v456_v58 = vand.u32 2147483647, %v1098_v9 }
  0xa2   :  { %v246_v11 = vpop.f32.mrf.mxu3  ;;  %v257_v12 = vpop.f32.mrf.mxu0  ;;  %v1142_v63 = vor.u32 1.1754944e-38, %v419_v44  ;;  %vm1159_vm6 = vcmp.eq.f32.partialorder %v417_v54, 8.507059e+37  ;;  %v92_v44 = vperm.slane %v1112_v32, 4 }
  0xa3   :  { %v258_v13 = vadd.f32 %v257_v12, %v84_v6  ;;  %v270_v14 = vpop.f32.mrf.mxu1  ;;  %v1144_v0 = vor.u32 1.1754944e-38, %v458_v45  ;;  %vm1163_vm7 = vcmp.eq.f32.partialorder %v456_v58, 8.507059e+37  ;;  %v93_v45 = vperm.slane %v1112_v32, 5 }
  0xa4   :  { %v866_v15 = vpop.eup %865  ;;  %v271_v16 = vadd.f32 %v270_v14, %v85_v8  ;;  %v94_v58 = vperm.slane %v1112_v32, 6 }
  0xa5   :  { %v868_v17 = vpop.eup %867  ;;  %v1102_v18 = vadd.f32 1.0, %v866_v15  ;;  %v831_v20 = vmul.f32 -1.442695, %v258_v13 }
  0xa6   :  { %v1104_v19 = vadd.f32 1.0, %v868_v17  ;;  %v833_v22 = vmul.f32 -1.442695, %v271_v16  ;;  %v1108_v25 = vpop.eup %869 }
  0xa7   :  { %873 = vrcp.f32 %v1102_v18  ;;  %v1110_v28 = vpop.eup %871  ;;  %v409_v34 = vmul.f32 %v1108_v25, %v1096_v7  ;;  %v498_v1 = vand.u32 2147483648, %v1102_v18  ;;  %v496_v3 = vand.u32 2147483647, %v1102_v18 }
  0xa8   :  { %875 = vrcp.f32 %v1104_v19  ;;  %v448_v36 = vmul.f32 %v1110_v28, %v1098_v9  ;;  %v538_v5 = vand.u32 2147483648, %v1104_v19  ;;  %vm414_vm3 = vweird.f32 %v1108_v25 }
  0xa9   :  { %v283_v24 = vpop.f32.mrf.mxu2  ;;  %877 = vpow2.f32 %v831_v20  ;;  %v410_v43 = vsub.f32 1.0, %v409_v34  ;;  %vm492_vm4 = vweird.f32 %v1102_v18  ;;  %vm453_vm5 = vweird.f32 %v1110_v28  ;;  %vm1187_vm10 = vmor %vm413_vm1, %vm414_vm3 }
  0xaa   :  { %v296_v26 = vpop.f32.mrf.mxu3  ;;  %v259_v27 = vpop.f32.mrf.mxu0  ;;  %v284_v29 = vadd.f32 %v283_v24, %v86_v21  ;;  %879 = vpow2.f32 %v833_v22  ;;  %v449_v49 = vsub.f32 1.0, %v448_v36  ;;  %v536_v12 = vand.u32 2147483647, %v1104_v19  ;;  %vm1200_vm12 = vmor %vm452_vm2, %vm453_vm5 }
  0xab   :  { %v272_v30 = vpop.f32.mrf.mxu1  ;;  %v297_v31 = vadd.f32 %v296_v26, %v87_v23  ;;  %v411_v62 = vmul.f32 %v1108_v25, %v410_v43  ;;  %v499_v16 = vor.u32 1.1754944e-38, %v498_v1  ;;  %vm532_vm8 = vweird.f32 %v1104_v19 }
  0xac   :  { %v835_v35 = vmul.f32 -1.442695, %v284_v29  ;;  %v450_v2 = vmul.f32 %v1110_v28, %v449_v49  ;;  %vm1171_vm9 = vcmp.eq.f32.partialorder %v496_v3, 8.507059e+37  ;;  %v1176_v26 = vor.u32 1.1754944e-38, %v538_v5 }
  0xad   :  { %v1114_v33 = vpop.eup %873  ;;  %v837_v37 = vmul.f32 -1.442695, %v297_v31  ;;  %v412_v13 = vadd.f32 %v1108_v25, %v411_v62  ;;  %vm1204_vm13 = vcmp.eq.f32.partialorder %v536_v12, 8.507059e+37 }
  0xae   :  { %v1120_v38 = vpop.eup %875  ;;  %881 = vpow2.f32 %v835_v35  ;;  %v488_v40 = vmul.f32 %v1114_v33, %v1102_v18  ;;  %v451_v22 = vadd.f32 %v1110_v28, %v450_v2  ;;  %vm493_vm11 = vweird.f32 %v1114_v33 }
  0xaf   :  { %v878_v42 = vpop.eup %877  ;;  %v528_v50 = vmul.f32 %v1120_v38, %v1104_v19  ;;  %883 = vpow2.f32 %v837_v37  ;;  %vm533_vm14 = vweird.f32 %v1120_v38  ;;  %vm1220_vm15 = vmor %vm492_vm4, %vm493_vm11 }
  0xb0   :  { %v880_v48 = vpop.eup %879  ;;  %v1131_v51 = vadd.f32 1.0, %v878_v42  ;;  %v489_v59 = vsub.f32 1.0, %v488_v40  ;;  %v416_v42 = vsel %vm1187_vm10, %v1108_v25, %v412_v13  ;;  %v455_v25 = vsel %vm1200_vm12, %v1110_v28, %v451_v22  ;;  %vm1254_vm0 = vmor %vm532_vm8, %vm533_vm14 }
  0xb1   :  { %v285_v46 = vpop.f32.mrf.mxu2  ;;  %v1139_v60 = vadd.f32 1.0, %v880_v48  ;;  %v529_v4 = vsub.f32 1.0, %v528_v50 }
  0xb2   :  { %v298_v52 = vpop.f32.mrf.mxu3  ;;  %v309_v53 = vpop.f32.mrf.mxu0  ;;  %885 = vrcp.f32 %v1131_v51  ;;  %v490_v11 = vmul.f32 %v1114_v33, %v489_v59  ;;  %v95_v59 = vperm.slane %v1112_v32, 7  ;;  %vm572_vm1 = vweird.f32 %v1131_v51 }
  0xb3   :  { %v310_v55 = vadd.f32 %v309_v53, %v88_v39  ;;  %v322_v56 = vpop.f32.mrf.mxu1  ;;  %887 = vrcp.f32 %v1139_v60  ;;  %v530_v24 = vmul.f32 %v1120_v38, %v529_v4  ;;  %v578_v52 = vand.u32 2147483648, %v1131_v51 }
  0xb4   :  { %v882_v61 = vpop.eup %881  ;;  %v323_v17 = vadd.f32 %v322_v56, %v89_v41  ;;  %v491_v39 = vadd.f32 %v1114_v33, %v490_v11  ;;  %v618_v53 = vand.u32 2147483648, %v1139_v60  ;;  %v616_v23 = vand.u32 2147483647, %v1139_v60 }
  0xb5   :  { %v1152_v6 = vadd.f32 1.0, %v882_v61  ;;  %v824_v8 = vmul.f32 -1.442695, %v310_v55  ;;  %v884_v10 = vpop.eup %883  ;;  %v531_v49 = vadd.f32 %v1120_v38, %v530_v24  ;;  %v576_v55 = vand.u32 2147483647, %v1131_v51 }
  0xb6   :  { %v1181_v34 = vadd.f32 1.0, %v884_v10  ;;  %v826_v35 = vmul.f32 -1.442695, %v323_v17  ;;  %v495_v28 = vsel %vm1220_vm15, %v1114_v33, %v491_v39  ;;  %v1243_v33 = vsel %vm1159_vm6, %v1142_v63, %v416_v42 }
  0xb7   :  { %889 = vpow2.f32 %v824_v8  ;;  %v1248_v61 = vsel %vm1163_vm7, %v1144_v0, %v455_v25  ;;  %v1262_v2 = vsel %vm1171_vm9, %v499_v16, %v495_v28  ;;  %v535_v0 = vsel %vm1254_vm0, %v1120_v38, %v531_v49 }
  0xb8   :  { %v1168_v21 = vpop.eup %885  ;;  %891 = vrcp.f32 %v1152_v6  ;;  %v579_v8 = vor.u32 1.1754944e-38, %v578_v52  ;;  %v1268_v10 = vor.u32 1.1754944e-38, %v618_v53  ;;  %vm1276_vm2 = vcmp.eq.f32.partialorder %v576_v55, 8.507059e+37 }
  0xb9   :  { %v335_v20 = vpop.f32.mrf.mxu2  ;;  %v568_v31 = vmul.f32 %v1168_v21, %v1131_v51  ;;  %893 = vpow2.f32 %v826_v35  ;;  %v1210_v46 = vpop.eup %887  ;;  %v658_v15 = vand.u32 2147483648, %v1152_v6  ;;  %v1287_v22 = vsel %vm1204_vm13, %v1176_v26, %v535_v0 }
  0xba   :  { %v336_v27 = vadd.f32 %v335_v20, %v90_v47  ;;  %v348_v29 = vpop.f32.mrf.mxu3  ;;  %v311_v30 = vpop.f32.mrf.mxu0  ;;  %v608_v56 = vmul.f32 %v1210_v46, %v1139_v60  ;;  %v656_v24 = vand.u32 2147483647, %v1152_v6  ;;  %vm573_vm3 = vweird.f32 %v1168_v21 }
  0xbb   :  { %v324_v36 = vpop.f32.mrf.mxu1  ;;  %v349_v41 = vadd.f32 %v348_v29, %v91_v57  ;;  %v569_v50 = vsub.f32 1.0, %v568_v31  ;;  %vm1312_vm4 = vmor %vm572_vm1, %vm573_vm3  ;;  %v698_v25 = vand.u32 2147483648, %v1181_v34  ;;  %vm613_vm8 = vweird.f32 %v1210_v46 }
  0xbc   :  { %v828_v40 = vmul.f32 -1.442695, %v336_v27  ;;  %v609_v38 = vsub.f32 1.0, %v608_v56  ;;  %vm612_vm10 = vweird.f32 %v1139_v60  ;;  %vm652_vm0 = vweird.f32 %v1152_v6 }
  0xbd   :  { %v830_v9 = vmul.f32 -1.442695, %v349_v41  ;;  %v890_v47 = vpop.eup %889  ;;  %v570_v19 = vmul.f32 %v1168_v21, %v569_v50  ;;  %v1308_v41 = vor.u32 1.1754944e-38, %v658_v15  ;;  %vm1404_vm3 = vcmp.eq.f32.partialorder %v616_v23, 8.507059e+37 }
  0xbe   :  { %895 = vpow2.f32 %v828_v40  ;;  %v1231_v54 = vadd.f32 1.0, %v890_v47  ;;  %v1233_v18 = vpop.eup %891  ;;  %v1303_v36 = vmul.f32 %v1210_v46, %v609_v38 }
  0xbf   :  { %897 = vrcp.f32 %v1181_v34  ;;  %v894_v1 = vpop.eup %893  ;;  %v648_v11 = vmul.f32 %v1233_v18, %v1152_v6  ;;  %v571_v27 = vadd.f32 %v1168_v21, %v570_v19  ;;  %vm653_vm13 = vweird.f32 %v1233_v18 }
  0xc0   :  { %899 = vpow2.f32 %v830_v9  ;;  %v1272_v12 = vadd.f32 1.0, %v894_v1  ;;  %v438_v39 = vand.u32 2147483648, %v1231_v54  ;;  %v436_v7 = vand.u32 2147483647, %v1231_v54 }
  0xc1   :  { %v337_v57 = vpop.f32.mrf.mxu2  ;;  %901 = vrcp.f32 %v1231_v54  ;;  %v649_v31 = vsub.f32 1.0, %v648_v11  ;;  %v575_v51 = vsel %vm1312_vm4, %v1168_v21, %v571_v27  ;;  %vm432_vm5 = vweird.f32 %v1231_v54 }
  0xc2   :  { %v350_v32 = vpop.f32.mrf.mxu3  ;;  %v361_v63 = vpop.f32.mrf.mxu0  ;;  %903 = vrcp.f32 %v1272_v12  ;;  %v439_v57 = vor.u32 1.1754944e-38, %v438_v39  ;;  %vm1335_vm6 = vcmp.eq.f32.partialorder %v436_v7, 8.507059e+37  ;;  %vm471_vm7 = vweird.f32 %v1272_v12 }
  0xc3   :  { %v362_v3 = vadd.f32 %v361_v63, %v92_v44  ;;  %v374_v4 = vpop.f32.mrf.mxu1  ;;  %v1326_v52 = vmul.f32 %v1233_v18, %v649_v31  ;;  %v1344_v63 = vsel %vm1276_vm2, %v579_v8, %v575_v51  ;;  %v475_v0 = vand.u32 2147483647, %v1272_v12 }
  0xc4   :  { %v896_v5 = vpop.eup %895  ;;  %v375_v29 = vadd.f32 %v374_v4, %v93_v45  ;;  %v696_v45 = vand.u32 2147483647, %v1181_v34  ;;  %v477_v14 = vand.u32 2147483648, %v1272_v12  ;;  %v611_v23 = vadd.f32 %v1210_v46, %v1303_v36 }
  0xc5   :  { %v1274_v13 = vpop.eup %897  ;;  %v1281_v16 = vadd.f32 1.0, %v896_v5  ;;  %v832_v17 = vmul.f32 -1.442695, %v362_v3  ;;  %vm476_vm4 = vcmp.eq.f32.partialorder %v475_v0, 8.507059e+37 }
  0xc6   :  { %v900_v20 = vpop.eup %899  ;;  %v1298_v35 = vmul.f32 %v1274_v13, %v1181_v34  ;;  %v834_v47 = vmul.f32 -1.442695, %v375_v29 }
  0xc7   :  { %905 = vrcp.f32 %v1281_v16  ;;  %v1294_v30 = vpop.eup %901  ;;  %v1300_v26 = vadd.f32 1.0, %v900_v20  ;;  %v515_v20 = vand.u32 2147483647, %v1281_v16  ;;  %vm511_vm15 = vweird.f32 %v1281_v16 }
  0xc8   :  { %907 = vpow2.f32 %v832_v17  ;;  %v428_v37 = vmul.f32 %v1294_v30, %v1231_v54  ;;  %v1323_v50 = vpop.eup %903  ;;  %v689_v28 = vsub.f32 1.0, %v1298_v35  ;;  %vm433_vm9 = vweird.f32 %v1294_v30 }
  0xc9   :  { %v387_v40 = vpop.f32.mrf.mxu2  ;;  %909 = vrcp.f32 %v1300_v26  ;;  %vm472_vm11 = vweird.f32 %v1323_v50  ;;  %vm1369_vm14 = vmor %vm432_vm5, %vm433_vm9  ;;  %v517_v39 = vand.u32 2147483648, %v1281_v16  ;;  %vm516_vm5 = vcmp.eq.f32.partialorder %v515_v20, 8.507059e+37 }
  0xca   :  { %v400_v43 = vpop.f32.mrf.mxu3  ;;  %v363_v44 = vpop.f32.mrf.mxu0  ;;  %v429_v9 = vsub.f32 1.0, %v428_v37  ;;  %v388_v48 = vadd.f32 %v387_v40, %v94_v58  ;;  %v467_v58 = vmul.f32 %v1323_v50, %v1272_v12  ;;  %911 = vpow2.f32 %v834_v47  ;;  %vm1384_vm1 = vmor %vm471_vm7, %vm472_vm11 }
  0xcb   :  { %v376_v49 = vpop.f32.mrf.mxu1  ;;  %v401_v53 = vadd.f32 %v400_v43, %v95_v59  ;;  %v478_v44 = vor.u32 1.1754944e-38, %v477_v14  ;;  %vm551_vm9 = vweird.f32 %v1300_v26  ;;  %v690_v6 = vmul.f32 %v1274_v13, %v689_v28 }
  0xcc   :  { %v430_v56 = vmul.f32 %v1294_v30, %v429_v9  ;;  %v836_v59 = vmul.f32 -1.442695, %v388_v48  ;;  %v468_v1 = vsub.f32 1.0, %v467_v58  ;;  %v555_v9 = vand.u32 2147483647, %v1300_v26 }
  0xcd   :  { %v1330_v55 = vpop.eup %905  ;;  %v838_v11 = vmul.f32 -1.442695, %v401_v53  ;;  %v518_v53 = vor.u32 1.1754944e-38, %v517_v39 }
  0xce   :  { %v908_v21 = vpop.eup %907  ;;  %v507_v32 = vmul.f32 %v1330_v55, %v1281_v16  ;;  %v431_v4 = vadd.f32 %v1294_v30, %v430_v56  ;;  %913 = vpow2.f32 %v836_v59  ;;  %v469_v8 = vmul.f32 %v1323_v50, %v468_v1 }
  0xcf   :  { %v1349_v19 = vadd.f32 1.0, %v908_v21  ;;  %v1351_v3 = vpop.eup %909  ;;  %vm512_vm12 = vweird.f32 %v1330_v55  ;;  %v557_v21 = vand.u32 2147483648, %v1300_v26  ;;  %vm1422_vm11 = vcmp.eq.f32.partialorder %v555_v9, 8.507059e+37 }
  0xd0   :  { %v508_v5 = vsub.f32 1.0, %v507_v32  ;;  %v547_v38 = vmul.f32 %v1351_v3, %v1300_v26  ;;  %v912_v29 = vpop.eup %911  ;;  %v470_v37 = vadd.f32 %v1323_v50, %v469_v8  ;;  %v435_v42 = vsel %vm1369_vm14, %v1294_v30, %v431_v4  ;;  %vm1396_vm2 = vmor %vm511_vm15, %vm512_vm12 }
  0xd1   :  { %v389_v15 = vpop.f32.mrf.mxu2  ;;  %915 = vrcp.f32 %v1349_v19  ;;  %v1389_v43 = vadd.f32 1.0, %v912_v29  ;;  %v440_v51 = vsel %vm1335_vm6, %v439_v57, %v435_v42  ;;  %vm552_vm7 = vweird.f32 %v1351_v3  ;;  %vm1431_vm6 = vmor %vm612_vm10, %vm613_vm8 }
  0xd2   :  { %v509_v17 = vmul.f32 %v1330_v55, %v508_v5  ;;  %v402_v27 = vpop.f32.mrf.mxu3  ;;  %v548_v40 = vsub.f32 1.0, %v547_v38  ;;  %917 = vpow2.f32 %v838_v11  ;;  %v474_v16 = vsel %vm1384_vm1, %v1323_v50, %v470_v37  ;;  %vm1442_vm12 = vmor %vm551_vm9, %vm552_vm7 }
  0xd3   :  { %919 = vrcp.f32 %v1389_v43  ;;  %v479_v50 = vsel %vm476_vm4, %v478_v44, %v474_v16  ;;  %v442_v1 = vmul.f32 %v440_v51, %v1243_v33  ;;  %v1440_v26 = vadd.f32 %v1233_v18, %v1326_v52  ;;  %vm1463_vm10 = vmor %vm652_vm0, %vm653_vm13 }
  0xd4   :  { %v510_v7 = vadd.f32 %v1330_v55, %v509_v17  ;;  %v549_v12 = vmul.f32 %v1351_v3, %v548_v40  ;;  %v914_v48 = vpop.eup %913  ;;  %v481_v0 = vmul.f32 %v479_v50, %v1248_v61  ;;  %v595_v60 = vand.u32 2147483647, %v1349_v19 }
  0xd5   :  { %v1419_v32 = vadd.f32 1.0, %v914_v48  ;;  %v615_v33 = vsel %vm1431_vm6, %v1210_v46, %v611_v23  ;;  %v558_v52 = vor.u32 1.1754944e-38, %v557_v21  ;;  %v597_v14 = vand.u32 2147483648, %v1349_v19 }
  0xd6   :  { %v514_v49 = vsel %vm1396_vm2, %v1330_v55, %v510_v7  ;;  %v550_v58 = vadd.f32 %v1351_v3, %v549_v12  ;;  %v482_v20 = vadd.f32 %v481_v0, %v442_v1  ;;  %v655_v27 = vsel %vm1463_vm10, %v1233_v18, %v1440_v26 }
  0xd7   :  { %v916_v56 = vpop.eup %915  ;;  %v519_v55 = vsel %vm516_vm5, %v518_v53, %v514_v49  ;;  %921 = vrcp.f32 %v1419_v32  ;;  %vm591_vm14 = vweird.f32 %v1349_v19  ;;  %vm1476_vm15 = vcmp.eq.f32.partialorder %v595_v60, 8.507059e+37 }
  0xd8   :  { %v587_v57 = vmul.f32 %v916_v56, %v1349_v19  ;;  %v918_v59 = vpop.eup %917  ;;  %v554_v8 = vsel %vm1442_vm12, %v1351_v3, %v550_v58  ;;  %v521_v38 = vmul.f32 %v519_v55, %v1262_v2  ;;  %vm592_vm8 = vweird.f32 %v916_v56 }
  0xd9   :  { %v1447_v11 = vadd.f32 1.0, %v918_v59  ;;  %v920_v61 = vpop.eup %919  ;;  %v637_v3 = vand.u32 2147483648, %v1389_v43  ;;  %v620_v2 = vsel %vm1404_vm3, %v1268_v10, %v615_v33  ;;  %vm593_vm13 = vmor %vm591_vm14, %vm592_vm8  ;;  %v598_v40 = vor.u32 1.1754944e-38, %v597_v14 }
  0xda   :  { %v588_v5 = vsub.f32 1.0, %v587_v57  ;;  %v627_v17 = vmul.f32 %v920_v61, %v1389_v43  ;;  %v522_v42 = vadd.f32 %v521_v38, %v482_v20  ;;  %v559_v10 = vsel %vm1422_vm11, %v558_v52, %v554_v8 }
  0xdb   :  { %923 = vrcp.f32 %v1447_v11  ;;  %v635_v54 = vand.u32 2147483647, %v1389_v43  ;;  %vm1485_vm0 = vcmp.eq.f32.partialorder %v656_v24, 8.507059e+37  ;;  %vm692_vm1 = vweird.f32 %v1181_v34 }
  0xdc   :  { %v589_v15 = vmul.f32 %v916_v56, %v588_v5  ;;  %v628_v37 = vsub.f32 1.0, %v627_v17  ;;  %vm632_vm2 = vweird.f32 %v920_v61  ;;  %vm631_vm3 = vweird.f32 %v1389_v43 }
  0xdd   :  { %v922_v39 = vpop.eup %921  ;;  %v638_v44 = vor.u32 1.1754944e-38, %v637_v3  ;;  %v561_v9 = vmul.f32 %v559_v10, %v1287_v22  ;;  %vm633_vm4 = vmor %vm631_vm3, %vm632_vm2  ;;  %v677_v49 = vand.u32 2147483648, %v1419_v32  ;;  %vm636_vm5 = vcmp.eq.f32.partialorder %v635_v54, 8.507059e+37 }
  0xde   :  { %v590_v29 = vadd.f32 %v916_v56, %v589_v15  ;;  %v629_v19 = vmul.f32 %v920_v61, %v628_v37  ;;  %v667_v7 = vmul.f32 %v922_v39, %v1419_v32  ;;  %v675_v51 = vand.u32 2147483647, %v1419_v32 }
  0xdf   :  { %v562_v53 = vadd.f32 %v561_v9, %v522_v42  ;;  %vm672_vm7 = vweird.f32 %v922_v39  ;;  %vm693_vm9 = vweird.f32 %v1274_v13  ;;  %vm671_vm11 = vweird.f32 %v1419_v32 }
  0xe0   :  { %v594_v16 = vsel %vm593_vm13, %v916_v56, %v590_v29  ;;  %v668_v12 = vsub.f32 1.0, %v667_v7  ;;  %v630_v48 = vadd.f32 %v920_v61, %v629_v19  ;;  %v691_v56 = vadd.f32 %v1274_v13, %v690_v6  ;;  %vm673_vm6 = vmor %vm671_vm11, %vm672_vm7 }
  0xe1   :  { %v599_v30 = vsel %vm1476_vm15, %v598_v40, %v594_v16  ;;  %v924_v24 = vpop.eup %923  ;;  %v717_v58 = vand.u32 2147483648, %v1447_v11  ;;  %v678_v21 = vor.u32 1.1754944e-38, %v677_v49  ;;  %v715_v62 = vand.u32 2147483647, %v1447_v11  ;;  %vm694_vm10 = vmor %vm692_vm1, %vm693_vm9 }
  0xe2   :  { %v601_v47 = vmul.f32 %v599_v30, %v1344_v63  ;;  %v707_v43 = vmul.f32 %v924_v24, %v1447_v11  ;;  %v669_v50 = vmul.f32 %v922_v39, %v668_v12  ;;  %v634_v35 = vsel %vm633_vm4, %v920_v61, %v630_v48 }
  0xe3   :  { %v639_v23 = vsel %vm636_vm5, %v638_v44, %v634_v35  ;;  %vm712_vm12 = vweird.f32 %v924_v24  ;;  %v660_v59 = vsel %vm1485_vm0, %v1308_v41, %v655_v27  ;;  %vm676_vm8 = vcmp.eq.f32.partialorder %v675_v51, 8.507059e+37 }
  0xe4   :  { %v708_v28 = vsub.f32 1.0, %v707_v43  ;;  %v602_v22 = vadd.f32 %v601_v47, %v562_v53  ;;  %v670_v63 = vadd.f32 %v922_v39, %v669_v50  ;;  %v641_v57 = vmul.f32 %v639_v23, %v620_v2 }
  0xe5   :  { %v695_v1 = vsel %vm694_vm10, %v1274_v13, %v691_v56  ;;  %vm711_vm14 = vweird.f32 %v1447_v11  ;;  %v699_v5 = vor.u32 1.1754944e-38, %v698_v25  ;;  %v718_v60 = vor.u32 1.1754944e-38, %v717_v58 }
  0xe6   :  { %v709_v55 = vmul.f32 %v924_v24, %v708_v28  ;;  %v674_v36 = vsel %vm673_vm6, %v922_v39, %v670_v63  ;;  %v642_v26 = vadd.f32 %v641_v57, %v602_v22  ;;  %vm713_vm15 = vmor %vm711_vm14, %vm712_vm12  ;;  %vm697_vm13 = vcmp.eq.f32.partialorder %v696_v45, 8.507059e+37 }
  0xe7   :  { %v679_v32 = vsel %vm676_vm8, %v678_v21, %v674_v36  ;;  %vm716_vm0 = vcmp.eq.f32.partialorder %v715_v62, 8.507059e+37  ;;  %v700_v61 = vsel %vm697_vm13, %v699_v5, %v695_v1 }
  0xe8   :  { %v710_v0 = vadd.f32 %v924_v24, %v709_v55  ;;  %v681_v4 = vmul.f32 %v679_v32, %v660_v59 }
  0xea   :  { %v714_v41 = vsel %vm713_vm15, %v924_v24, %v710_v0  ;;  %v682_v33 = vadd.f32 %v681_v4, %v642_v26 }
  0xeb   :  { %v719_v8 = vsel %vm716_vm0, %v718_v60, %v714_v41 }
  0xec   :  { %v721_v52 = vmul.f32 %v719_v8, %v700_v61 }
  0xee   :  { %v722_v13 = vadd.f32 %v721_v52, %v682_v33 }
  0xf0   :  { %v723_v11 = vmul.f32 0.35355338, %v722_v13 }
  0xf2   :  { %724 = vst [vmem:[#allocation8] sm:$0xff] %v723_v11 }
  0xf3   :  { %735 = dma.vmem_to_hbm [thread:$0]  %s731_s2, 128, %s733_s30, [#allocation4]  }
  0xf4   :  { %1025 = dma.done.wait [#allocation4], 128  }
  0xf5   :  { %1026 = vsyncadd [#allocation4], 4294967168 }
  0xf6   :  { %740 = vsyncpa [#allocation3], 1 }
  0xf7   :  { %741 = vsyncpa [#allocation6], 1 }
  0xf8   :  { %742 = vsyncpa [#allocation4], 1 }

// kernel: tpu_custom_call.1
= control target key start
LH: loop header
LB: loop body
LE: loop exit
PB: predicated region body
PF: predicated region fallthrough
CT: control target
= control target key end

     0   :  { %8 = vsyncpa [#allocation3], 0  ;;  %s1521_s0 = inlined_call_operand.hbm [shape: bf16[8,16], index: 0, kind: input, shape index: {}]   ;;  %s1522_s1 = inlined_call_operand.hbm [shape: bf16[16,2048], index: 1, kind: input, shape index: {}]   ;;  %s1523_s2 = inlined_call_operand.hbm [shape: f32[1,2048], index: 2, kind: input, shape index: {}]   ;;  %s1524_s3 = inlined_call_operand.hbm [shape: f32[8,128], index: 3, kind: output, shape index: {}]  }
   0x1   :  { %9 = vsyncpa [#allocation6], 0  ;;  %s26_s14 = sshll.u32 %s1522_s1, 4  ;;  %s27_s14 = int_to_ptr.hbm [resolvable:$true] %s26_s14 }
   0x2   :  { %10 = vsyncpa [#allocation4], 0  ;;  %s1027_s15 = smov [#allocation5]   ;;  %s16_s19 = sshll.u32 %s1521_s0, 4  ;;  %s17_s19 = int_to_ptr.hbm [resolvable:$true] %s16_s19 }
   0x3   :  { %s28_s16 = sshll.u32 %s1027_s15, 4  ;;  %s1028_s20 = smov 1024   ;;  %s29_s16 = int_to_ptr.vmem [resolvable:$true] %s28_s16 }
   0x4   :  { %s1029_s21 = smov 64   ;;  %s1030_s22 = smov [#allocation2]  }
   0x5   :  { %34 = dma.hbm_to_vmem [thread:$0]  %s27_s14, 2048, %s29_s16, [#allocation6], %s1028_s20, %s1028_s20, %s1029_s21  }
   0x6   :  { %s18_s23 = sshll.u32 %s1030_s22, 4  ;;  %s40_s26 = sshll.u32 %s1523_s2, 4  ;;  %s19_s23 = int_to_ptr.vmem [resolvable:$true] %s18_s23  ;;  %s41_s26 = int_to_ptr.hbm [resolvable:$true] %s40_s26 }
   0x7   :  { %21 = dma.hbm_to_vmem [thread:$0]  %s17_s19, 64, %s19_s23, [#allocation3]  }
   0x8   :  { %s1031_s1 = smov [#allocation7]  }
   0x9   :  { %s42_s27 = sshll.u32 %s1031_s1, 4  ;;  %s43_s27 = int_to_ptr.vmem [resolvable:$true] %s42_s27 }
   0xa   :  { %45 = dma.hbm_to_vmem [thread:$0]  %s41_s26, 256, %s43_s27, [#allocation6]  }
   0xb   :  { %1021 = dma.done.wait [#allocation3], 64  }
   0xc   :  { %1022 = vsyncadd [#allocation3], 4294967232 }
   0xd   :  { %1023 = dma.done.wait [#allocation6], 2304  }
   0xe   :  { %1024 = vsyncadd [#allocation6], 4294964992  ;;  %vm192_vm0 = vcmask 130048   ;;  %v745_v0 = vld [vmem:[#allocation5] sm:$0xf]  ;;  %s1032_s0 = smov [#allocation8]  }
   0xf   :  { %v847_v1 = vld [vmem:[#allocation5 + $0x3c] sm:$0xf0]  ;;  %v839_v2 = vld [vmem:[#allocation5 + $0x4] sm:$0xf]  ;;  %v753_v5 = vld [vmem:[#allocation5 + $0x8] sm:$0xf] }
  0x10   :  { %v746_v3 = vor.u32 %v847_v1, %v745_v0  ;;  %v747_v4 = vld [vmem:[#allocation5 + $0x40] sm:$0xf0]  ;;  %v848_v6 = vld [vmem:[#allocation5 + $0x44] sm:$0xf0]  ;;  %v840_v9 = vld [vmem:[#allocation5 + $0xc] sm:$0xf] }
  0x11   :  { %v750_v7 = vor.u32 %v839_v2, %v747_v4  ;;  %v754_v8 = vor.u32 %v848_v6, %v753_v5  ;;  %v755_v10 = vld [vmem:[#allocation5 + $0x48] sm:$0xf0]  ;;  %v1062_v11 = vld [vmem:[#allocation2] sm:$0xf]  ;;  %v769_v13 = vld [vmem:[#allocation5 + $0x18] sm:$0xf] }
  0x12   :  { %203 = vmatpush.bf16.msra.mxu0 %v746_v3  ;;  %v758_v12 = vor.u32 %v840_v9, %v755_v10  ;;  %v850_v14 = vld [vmem:[#allocation5 + $0x54] sm:$0xf0]  ;;  %v761_v15 = vld [vmem:[#allocation5 + $0x10] sm:$0xf]  ;;  %v842_v18 = vld [vmem:[#allocation5 + $0x1c] sm:$0xf] }
  0x13   :  { %216 = vmatpush.bf16.msra.mxu1 %v750_v7  ;;  %229 = vmatpush.bf16.msra.mxu2 %v754_v8  ;;  %v770_v16 = vor.u32 %v850_v14, %v769_v13  ;;  %v849_v17 = vld [vmem:[#allocation5 + $0x4c] sm:$0xf0]  ;;  %v771_v19 = vld [vmem:[#allocation5 + $0x58] sm:$0xf0]  ;;  %v841_v22 = vld [vmem:[#allocation5 + $0x14] sm:$0xf] }
  0x14   :  { %242 = vmatpush.bf16.msra.mxu3 %v758_v12  ;;  %v762_v20 = vor.u32 %v849_v17, %v761_v15  ;;  %v774_v21 = vor.u32 %v842_v18, %v771_v19  ;;  %v763_v23 = vld [vmem:[#allocation5 + $0x50] sm:$0xf0]  ;;  %v785_v24 = vld [vmem:[#allocation5 + $0x28] sm:$0xf]  ;;  %v777_v27 = vld [vmem:[#allocation5 + $0x20] sm:$0xf] }
  0x15   :  { %807 = vmatmul.msk.bf16.vlgmr.msra.gmra.mxu0 %vm192_vm0, %v1062_v11  ;;  %v766_v25 = vor.u32 %v841_v22, %v763_v23  ;;  %v852_v26 = vld [vmem:[#allocation5 + $0x64] sm:$0xf0]  ;;  %v851_v28 = vld [vmem:[#allocation5 + $0x5c] sm:$0xf0]  ;;  %v844_v31 = vld [vmem:[#allocation5 + $0x2c] sm:$0xf] }
  0x16   :  { %808 = vmatmul.msk.bf16.vlgmr.msra.gmra.mxu1 %vm192_vm0, %v1062_v11  ;;  %809 = vmatmul.msk.bf16.vlgmr.msra.gmra.mxu2 %vm192_vm0, %v1062_v11  ;;  %v786_v29 = vor.u32 %v852_v26, %v785_v24  ;;  %v778_v30 = vor.u32 %v851_v28, %v777_v27  ;;  %v787_v32 = vld [vmem:[#allocation5 + $0x68] sm:$0xf0]  ;;  %v843_v33 = vld [vmem:[#allocation5 + $0x24] sm:$0xf]  ;;  %v801_v37 = vld [vmem:[#allocation5 + $0x38] sm:$0xf] }
  0x17   :  { %281 = vmatpush.bf16.msrb.mxu2 %v770_v16  ;;  %810 = vmatmul.msk.bf16.vlgmr.msra.gmra.mxu3 %vm192_vm0, %v1062_v11  ;;  %v790_v34 = vor.u32 %v844_v31, %v787_v32  ;;  %v779_v35 = vld [vmem:[#allocation5 + $0x60] sm:$0xf0]  ;;  %v854_v38 = vld [vmem:[#allocation5 + $0x74] sm:$0xf0]  ;;  %v793_v39 = vld [vmem:[#allocation5 + $0x30] sm:$0xf] }
  0x18   :  { %255 = vmatpush.bf16.msrb.mxu0 %v762_v20  ;;  %294 = vmatpush.bf16.msrb.mxu3 %v774_v21  ;;  %v782_v36 = vor.u32 %v843_v33, %v779_v35  ;;  %v853_v40 = vld [vmem:[#allocation5 + $0x6c] sm:$0xf0]  ;;  %v846_v41 = vld [vmem:[#allocation5 + $0x3c] sm:$0xf]  ;;  %v845_v43 = vld [vmem:[#allocation5 + $0x34] sm:$0xf]  ;;  %v802_v45 = vor.u32 %v854_v38, %v801_v37 }
  0x19   :  { %268 = vmatpush.bf16.msrb.mxu1 %v766_v25  ;;  %v803_v42 = vld [vmem:[#allocation5 + $0x78] sm:$0xf0]  ;;  %v795_v44 = vld [vmem:[#allocation5 + $0x70] sm:$0xf0]  ;;  %v794_v46 = vor.u32 %v853_v40, %v793_v39  ;;  %v76_v49 = vld [vmem:[#allocation7] sm:$0xff]  ;;  %s730_s2 = sshll.u32 %s1032_s0, 4  ;;  %s731_s2 = int_to_ptr.vmem [resolvable:$true] %s730_s2 }
  0x1a   :  { %v806_v47 = vor.u32 %v846_v41, %v803_v42  ;;  %v798_v48 = vor.u32 %v845_v43, %v795_v44  ;;  %v80_v50 = vperm.slane %v76_v49, 0  ;;  %v81_v51 = vperm.slane %v76_v49, 1  ;;  %v1112_v32 = vld [vmem:[#allocation7 + $0x8] sm:$0xff]  ;;  %s732_s30 = sshll.u32 %s1524_s3, 4  ;;  %s733_s30 = int_to_ptr.hbm [resolvable:$true] %s732_s30 }
  0x1b   :  { %333 = vmatpush.bf16.msra.mxu2 %v786_v29  ;;  %v82_v58 = vperm.slane %v76_v49, 2  ;;  %v83_v59 = vperm.slane %v76_v49, 3  ;;  %v84_v6 = vperm.slane %v76_v49, 4  ;;  %v85_v8 = vperm.slane %v76_v49, 5 }
  0x1c   :  { %307 = vmatpush.bf16.msra.mxu0 %v778_v30  ;;  %346 = vmatpush.bf16.msra.mxu3 %v790_v34  ;;  %v86_v21 = vperm.slane %v76_v49, 6  ;;  %v87_v23 = vperm.slane %v76_v49, 7  ;;  %v88_v39 = vperm.slane %v1112_v32, 0  ;;  %v89_v41 = vperm.slane %v1112_v32, 1 }
  0x1d   :  { %320 = vmatpush.bf16.msra.mxu1 %v782_v36 }
  0x25   :  { %811 = vmatmul.msk.bf16.vlgmr.msrb.gmra.mxu0 %vm192_vm0, %v1062_v11 }
  0x26   :  { %812 = vmatmul.msk.bf16.vlgmr.msrb.gmra.mxu1 %vm192_vm0, %v1062_v11  ;;  %813 = vmatmul.msk.bf16.vlgmr.msrb.gmra.mxu2 %vm192_vm0, %v1062_v11 }
  0x27   :  { %814 = vmatmul.msk.bf16.vlgmr.msrb.gmra.mxu3 %vm192_vm0, %v1062_v11  ;;  %385 = vmatpush.bf16.msrb.mxu2 %v802_v45 }
  0x28   :  { %359 = vmatpush.bf16.msrb.mxu0 %v794_v46  ;;  %398 = vmatpush.bf16.msrb.mxu3 %v806_v47  ;;  %v90_v47 = vperm.slane %v1112_v32, 2 }
  0x29   :  { %372 = vmatpush.bf16.msrb.mxu1 %v798_v48 }
  0x35   :  { %815 = vmatmul.msk.bf16.vlgmr.msra.gmra.mxu0 %vm192_vm0, %v1062_v11 }
  0x36   :  { %816 = vmatmul.msk.bf16.vlgmr.msra.gmra.mxu1 %vm192_vm0, %v1062_v11  ;;  %817 = vmatmul.msk.bf16.vlgmr.msra.gmra.mxu2 %vm192_vm0, %v1062_v11 }
  0x37   :  { %818 = vmatmul.msk.bf16.vlgmr.msra.gmra.mxu3 %vm192_vm0, %v1062_v11 }
  0x45   :  { %819 = vmatmul.msk.bf16.vlgmr.msrb.gmra.mxu0 %vm192_vm0, %v1062_v11 }
  0x46   :  { %820 = vmatmul.msk.bf16.vlgmr.msrb.gmra.mxu1 %vm192_vm0, %v1062_v11  ;;  %821 = vmatmul.msk.bf16.vlgmr.msrb.gmra.mxu2 %vm192_vm0, %v1062_v11 }
  0x47   :  { %822 = vmatmul.msk.bf16.vlgmr.msrb.gmra.mxu3 %vm192_vm0, %v1062_v11 }
  0x92   :  { %v205_v52 = vpop.f32.mrf.mxu0 }
  0x93   :  { %v206_v53 = vadd.f32 %v205_v52, %v80_v50  ;;  %v218_v54 = vpop.f32.mrf.mxu1 }
  0x94   :  { %v219_v55 = vadd.f32 %v218_v54, %v81_v51 }
  0x95   :  { %v823_v56 = vmul.f32 -1.442695, %v206_v53 }
  0x96   :  { %v825_v57 = vmul.f32 -1.442695, %v219_v55 }
  0x97   :  { %861 = vpow2.f32 %v823_v56 }
  0x98   :  { %863 = vpow2.f32 %v825_v57  ;;  %v91_v57 = vperm.slane %v1112_v32, 3 }
  0x99   :  { %v231_v60 = vpop.f32.mrf.mxu2 }
  0x9a   :  { %v232_v61 = vadd.f32 %v231_v60, %v82_v58  ;;  %v244_v62 = vpop.f32.mrf.mxu3  ;;  %v207_v63 = vpop.f32.mrf.mxu0 }
  0x9b   :  { %v245_v0 = vadd.f32 %v244_v62, %v83_v59  ;;  %v220_v1 = vpop.f32.mrf.mxu1 }
  0x9c   :  { %v827_v2 = vmul.f32 -1.442695, %v232_v61 }
  0x9d   :  { %v862_v3 = vpop.eup %861  ;;  %v829_v4 = vmul.f32 -1.442695, %v245_v0 }
  0x9e   :  { %v864_v5 = vpop.eup %863  ;;  %865 = vpow2.f32 %v827_v2  ;;  %v1096_v7 = vadd.f32 1.0, %v862_v3 }
  0x9f   :  { %867 = vpow2.f32 %v829_v4  ;;  %v1098_v9 = vadd.f32 1.0, %v864_v5 }
  0xa0   :  { %869 = vrcp.f32 %v1096_v7  ;;  %v419_v44 = vand.u32 2147483648, %v1096_v7  ;;  %vm413_vm1 = vweird.f32 %v1096_v7  ;;  %v417_v54 = vand.u32 2147483647, %v1096_v7 }
  0xa1   :  { %v233_v10 = vpop.f32.mrf.mxu2  ;;  %871 = vrcp.f32 %v1098_v9  ;;  %v458_v45 = vand.u32 2147483648, %v1098_v9  ;;  %vm452_vm2 = vweird.f32 %v1098_v9  ;;  %v456_v58 = vand.u32 2147483647, %v1098_v9 }
  0xa2   :  { %v246_v11 = vpop.f32.mrf.mxu3  ;;  %v257_v12 = vpop.f32.mrf.mxu0  ;;  %v1142_v63 = vor.u32 1.1754944e-38, %v419_v44  ;;  %vm1159_vm6 = vcmp.eq.f32.partialorder %v417_v54, 8.507059e+37  ;;  %v92_v44 = vperm.slane %v1112_v32, 4 }
  0xa3   :  { %v258_v13 = vadd.f32 %v257_v12, %v84_v6  ;;  %v270_v14 = vpop.f32.mrf.mxu1  ;;  %v1144_v0 = vor.u32 1.1754944e-38, %v458_v45  ;;  %vm1163_vm7 = vcmp.eq.f32.partialorder %v456_v58, 8.507059e+37  ;;  %v93_v45 = vperm.slane %v1112_v32, 5 }
  0xa4   :  { %v866_v15 = vpop.eup %865  ;;  %v271_v16 = vadd.f32 %v270_v14, %v85_v8  ;;  %v94_v58 = vperm.slane %v1112_v32, 6 }
  0xa5   :  { %v868_v17 = vpop.eup %867  ;;  %v1102_v18 = vadd.f32 1.0, %v866_v15  ;;  %v831_v20 = vmul.f32 -1.442695, %v258_v13 }
  0xa6   :  { %v1104_v19 = vadd.f32 1.0, %v868_v17  ;;  %v833_v22 = vmul.f32 -1.442695, %v271_v16  ;;  %v1108_v25 = vpop.eup %869 }
  0xa7   :  { %873 = vrcp.f32 %v1102_v18  ;;  %v1110_v28 = vpop.eup %871  ;;  %v409_v34 = vmul.f32 %v1108_v25, %v1096_v7  ;;  %v498_v1 = vand.u32 2147483648, %v1102_v18  ;;  %v496_v3 = vand.u32 2147483647, %v1102_v18 }
  0xa8   :  { %875 = vrcp.f32 %v1104_v19  ;;  %v448_v36 = vmul.f32 %v1110_v28, %v1098_v9  ;;  %v538_v5 = vand.u32 2147483648, %v1104_v19  ;;  %vm414_vm3 = vweird.f32 %v1108_v25 }
  0xa9   :  { %v283_v24 = vpop.f32.mrf.mxu2  ;;  %877 = vpow2.f32 %v831_v20  ;;  %v410_v43 = vsub.f32 1.0, %v409_v34  ;;  %vm492_vm4 = vweird.f32 %v1102_v18  ;;  %vm453_vm5 = vweird.f32 %v1110_v28  ;;  %vm1187_vm10 = vmor %vm413_vm1, %vm414_vm3 }
  0xaa   :  { %v296_v26 = vpop.f32.mrf.mxu3  ;;  %v259_v27 = vpop.f32.mrf.mxu0  ;;  %v284_v29 = vadd.f32 %v283_v24, %v86_v21  ;;  %879 = vpow2.f32 %v833_v22  ;;  %v449_v49 = vsub.f32 1.0, %v448_v36  ;;  %v536_v12 = vand.u32 2147483647, %v1104_v19  ;;  %vm1200_vm12 = vmor %vm452_vm2, %vm453_vm5 }
  0xab   :  { %v272_v30 = vpop.f32.mrf.mxu1  ;;  %v297_v31 = vadd.f32 %v296_v26, %v87_v23  ;;  %v411_v62 = vmul.f32 %v1108_v25, %v410_v43  ;;  %v499_v16 = vor.u32 1.1754944e-38, %v498_v1  ;;  %vm532_vm8 = vweird.f32 %v1104_v19 }
  0xac   :  { %v835_v35 = vmul.f32 -1.442695, %v284_v29  ;;  %v450_v2 = vmul.f32 %v1110_v28, %v449_v49  ;;  %vm1171_vm9 = vcmp.eq.f32.partialorder %v496_v3, 8.507059e+37  ;;  %v1176_v26 = vor.u32 1.1754944e-38, %v538_v5 }
  0xad   :  { %v1114_v33 = vpop.eup %873  ;;  %v837_v37 = vmul.f32 -1.442695, %v297_v31  ;;  %v412_v13 = vadd.f32 %v1108_v25, %v411_v62  ;;  %vm1204_vm13 = vcmp.eq.f32.partialorder %v536_v12, 8.507059e+37 }
  0xae   :  { %v1120_v38 = vpop.eup %875  ;;  %881 = vpow2.f32 %v835_v35  ;;  %v488_v40 = vmul.f32 %v1114_v33, %v1102_v18  ;;  %v451_v22 = vadd.f32 %v1110_v28, %v450_v2  ;;  %vm493_vm11 = vweird.f32 %v1114_v33 }
  0xaf   :  { %v878_v42 = vpop.eup %877  ;;  %v528_v50 = vmul.f32 %v1120_v38, %v1104_v19  ;;  %883 = vpow2.f32 %v837_v37  ;;  %vm533_vm14 = vweird.f32 %v1120_v38  ;;  %vm1220_vm15 = vmor %vm492_vm4, %vm493_vm11 }
  0xb0   :  { %v880_v48 = vpop.eup %879  ;;  %v1131_v51 = vadd.f32 1.0, %v878_v42  ;;  %v489_v59 = vsub.f32 1.0, %v488_v40  ;;  %v416_v42 = vsel %vm1187_vm10, %v1108_v25, %v412_v13  ;;  %v455_v25 = vsel %vm1200_vm12, %v1110_v28, %v451_v22  ;;  %vm1254_vm0 = vmor %vm532_vm8, %vm533_vm14 }
  0xb1   :  { %v285_v46 = vpop.f32.mrf.mxu2  ;;  %v1139_v60 = vadd.f32 1.0, %v880_v48  ;;  %v529_v4 = vsub.f32 1.0, %v528_v50 }
  0xb2   :  { %v298_v52 = vpop.f32.mrf.mxu3  ;;  %v309_v53 = vpop.f32.mrf.mxu0  ;;  %885 = vrcp.f32 %v1131_v51  ;;  %v490_v11 = vmul.f32 %v1114_v33, %v489_v59  ;;  %v95_v59 = vperm.slane %v1112_v32, 7  ;;  %vm572_vm1 = vweird.f32 %v1131_v51 }
  0xb3   :  { %v310_v55 = vadd.f32 %v309_v53, %v88_v39  ;;  %v322_v56 = vpop.f32.mrf.mxu1  ;;  %887 = vrcp.f32 %v1139_v60  ;;  %v530_v24 = vmul.f32 %v1120_v38, %v529_v4  ;;  %v578_v52 = vand.u32 2147483648, %v1131_v51 }
  0xb4   :  { %v882_v61 = vpop.eup %881  ;;  %v323_v17 = vadd.f32 %v322_v56, %v89_v41  ;;  %v491_v39 = vadd.f32 %v1114_v33, %v490_v11  ;;  %v618_v53 = vand.u32 2147483648, %v1139_v60  ;;  %v616_v23 = vand.u32 2147483647, %v1139_v60 }
  0xb5   :  { %v1152_v6 = vadd.f32 1.0, %v882_v61  ;;  %v824_v8 = vmul.f32 -1.442695, %v310_v55  ;;  %v884_v10 = vpop.eup %883  ;;  %v531_v49 = vadd.f32 %v1120_v38, %v530_v24  ;;  %v576_v55 = vand.u32 2147483647, %v1131_v51 }
  0xb6   :  { %v1181_v34 = vadd.f32 1.0, %v884_v10  ;;  %v826_v35 = vmul.f32 -1.442695, %v323_v17  ;;  %v495_v28 = vsel %vm1220_vm15, %v1114_v33, %v491_v39  ;;  %v1243_v33 = vsel %vm1159_vm6, %v1142_v63, %v416_v42 }
  0xb7   :  { %889 = vpow2.f32 %v824_v8  ;;  %v1248_v61 = vsel %vm1163_vm7, %v1144_v0, %v455_v25  ;;  %v1262_v2 = vsel %vm1171_vm9, %v499_v16, %v495_v28  ;;  %v535_v0 = vsel %vm1254_vm0, %v1120_v38, %v531_v49 }
  0xb8   :  { %v1168_v21 = vpop.eup %885  ;;  %891 = vrcp.f32 %v1152_v6  ;;  %v579_v8 = vor.u32 1.1754944e-38, %v578_v52  ;;  %v1268_v10 = vor.u32 1.1754944e-38, %v618_v53  ;;  %vm1276_vm2 = vcmp.eq.f32.partialorder %v576_v55, 8.507059e+37 }
  0xb9   :  { %v335_v20 = vpop.f32.mrf.mxu2  ;;  %v568_v31 = vmul.f32 %v1168_v21, %v1131_v51  ;;  %893 = vpow2.f32 %v826_v35  ;;  %v1210_v46 = vpop.eup %887  ;;  %v658_v15 = vand.u32 2147483648, %v1152_v6  ;;  %v1287_v22 = vsel %vm1204_vm13, %v1176_v26, %v535_v0 }
  0xba   :  { %v336_v27 = vadd.f32 %v335_v20, %v90_v47  ;;  %v348_v29 = vpop.f32.mrf.mxu3  ;;  %v311_v30 = vpop.f32.mrf.mxu0  ;;  %v608_v56 = vmul.f32 %v1210_v46, %v1139_v60  ;;  %v656_v24 = vand.u32 2147483647, %v1152_v6  ;;  %vm573_vm3 = vweird.f32 %v1168_v21 }
  0xbb   :  { %v324_v36 = vpop.f32.mrf.mxu1  ;;  %v349_v41 = vadd.f32 %v348_v29, %v91_v57  ;;  %v569_v50 = vsub.f32 1.0, %v568_v31  ;;  %vm1312_vm4 = vmor %vm572_vm1, %vm573_vm3  ;;  %v698_v25 = vand.u32 2147483648, %v1181_v34  ;;  %vm613_vm8 = vweird.f32 %v1210_v46 }
  0xbc   :  { %v828_v40 = vmul.f32 -1.442695, %v336_v27  ;;  %v609_v38 = vsub.f32 1.0, %v608_v56  ;;  %vm612_vm10 = vweird.f32 %v1139_v60  ;;  %vm652_vm0 = vweird.f32 %v1152_v6 }
  0xbd   :  { %v830_v9 = vmul.f32 -1.442695, %v349_v41  ;;  %v890_v47 = vpop.eup %889  ;;  %v570_v19 = vmul.f32 %v1168_v21, %v569_v50  ;;  %v1308_v41 = vor.u32 1.1754944e-38, %v658_v15  ;;  %vm1404_vm3 = vcmp.eq.f32.partialorder %v616_v23, 8.507059e+37 }
  0xbe   :  { %895 = vpow2.f32 %v828_v40  ;;  %v1231_v54 = vadd.f32 1.0, %v890_v47  ;;  %v1233_v18 = vpop.eup %891  ;;  %v1303_v36 = vmul.f32 %v1210_v46, %v609_v38 }
  0xbf   :  { %897 = vrcp.f32 %v1181_v34  ;;  %v894_v1 = vpop.eup %893  ;;  %v648_v11 = vmul.f32 %v1233_v18, %v1152_v6  ;;  %v571_v27 = vadd.f32 %v1168_v21, %v570_v19  ;;  %vm653_vm13 = vweird.f32 %v1233_v18 }
  0xc0   :  { %899 = vpow2.f32 %v830_v9  ;;  %v1272_v12 = vadd.f32 1.0, %v894_v1  ;;  %v438_v39 = vand.u32 2147483648, %v1231_v54  ;;  %v436_v7 = vand.u32 2147483647, %v1231_v54 }
  0xc1   :  { %v337_v57 = vpop.f32.mrf.mxu2  ;;  %901 = vrcp.f32 %v1231_v54  ;;  %v649_v31 = vsub.f32 1.0, %v648_v11  ;;  %v575_v51 = vsel %vm1312_vm4, %v1168_v21, %v571_v27  ;;  %vm432_vm5 = vweird.f32 %v1231_v54 }
  0xc2   :  { %v350_v32 = vpop.f32.mrf.mxu3  ;;  %v361_v63 = vpop.f32.mrf.mxu0  ;;  %903 = vrcp.f32 %v1272_v12  ;;  %v439_v57 = vor.u32 1.1754944e-38, %v438_v39  ;;  %vm1335_vm6 = vcmp.eq.f32.partialorder %v436_v7, 8.507059e+37  ;;  %vm471_vm7 = vweird.f32 %v1272_v12 }
  0xc3   :  { %v362_v3 = vadd.f32 %v361_v63, %v92_v44  ;;  %v374_v4 = vpop.f32.mrf.mxu1  ;;  %v1326_v52 = vmul.f32 %v1233_v18, %v649_v31  ;;  %v1344_v63 = vsel %vm1276_vm2, %v579_v8, %v575_v51  ;;  %v475_v0 = vand.u32 2147483647, %v1272_v12 }
  0xc4   :  { %v896_v5 = vpop.eup %895  ;;  %v375_v29 = vadd.f32 %v374_v4, %v93_v45  ;;  %v696_v45 = vand.u32 2147483647, %v1181_v34  ;;  %v477_v14 = vand.u32 2147483648, %v1272_v12  ;;  %v611_v23 = vadd.f32 %v1210_v46, %v1303_v36 }
  0xc5   :  { %v1274_v13 = vpop.eup %897  ;;  %v1281_v16 = vadd.f32 1.0, %v896_v5  ;;  %v832_v17 = vmul.f32 -1.442695, %v362_v3  ;;  %vm476_vm4 = vcmp.eq.f32.partialorder %v475_v0, 8.507059e+37 }
  0xc6   :  { %v900_v20 = vpop.eup %899  ;;  %v1298_v35 = vmul.f32 %v1274_v13, %v1181_v34  ;;  %v834_v47 = vmul.f32 -1.442695, %v375_v29 }
  0xc7   :  { %905 = vrcp.f32 %v1281_v16  ;;  %v1294_v30 = vpop.eup %901  ;;  %v1300_v26 = vadd.f32 1.0, %v900_v20  ;;  %v515_v20 = vand.u32 2147483647, %v1281_v16  ;;  %vm511_vm15 = vweird.f32 %v1281_v16 }
  0xc8   :  { %907 = vpow2.f32 %v832_v17  ;;  %v428_v37 = vmul.f32 %v1294_v30, %v1231_v54  ;;  %v1323_v50 = vpop.eup %903  ;;  %v689_v28 = vsub.f32 1.0, %v1298_v35  ;;  %vm433_vm9 = vweird.f32 %v1294_v30 }
  0xc9   :  { %v387_v40 = vpop.f32.mrf.mxu2  ;;  %909 = vrcp.f32 %v1300_v26  ;;  %vm472_vm11 = vweird.f32 %v1323_v50  ;;  %vm1369_vm14 = vmor %vm432_vm5, %vm433_vm9  ;;  %v517_v39 = vand.u32 2147483648, %v1281_v16  ;;  %vm516_vm5 = vcmp.eq.f32.partialorder %v515_v20, 8.507059e+37 }
  0xca   :  { %v400_v43 = vpop.f32.mrf.mxu3  ;;  %v363_v44 = vpop.f32.mrf.mxu0  ;;  %v429_v9 = vsub.f32 1.0, %v428_v37  ;;  %v388_v48 = vadd.f32 %v387_v40, %v94_v58  ;;  %v467_v58 = vmul.f32 %v1323_v50, %v1272_v12  ;;  %911 = vpow2.f32 %v834_v47  ;;  %vm1384_vm1 = vmor %vm471_vm7, %vm472_vm11 }
  0xcb   :  { %v376_v49 = vpop.f32.mrf.mxu1  ;;  %v401_v53 = vadd.f32 %v400_v43, %v95_v59  ;;  %v478_v44 = vor.u32 1.1754944e-38, %v477_v14  ;;  %vm551_vm9 = vweird.f32 %v1300_v26  ;;  %v690_v6 = vmul.f32 %v1274_v13, %v689_v28 }
  0xcc   :  { %v430_v56 = vmul.f32 %v1294_v30, %v429_v9  ;;  %v836_v59 = vmul.f32 -1.442695, %v388_v48  ;;  %v468_v1 = vsub.f32 1.0, %v467_v58  ;;  %v555_v9 = vand.u32 2147483647, %v1300_v26 }
  0xcd   :  { %v1330_v55 = vpop.eup %905  ;;  %v838_v11 = vmul.f32 -1.442695, %v401_v53  ;;  %v518_v53 = vor.u32 1.1754944e-38, %v517_v39 }
  0xce   :  { %v908_v21 = vpop.eup %907  ;;  %v507_v32 = vmul.f32 %v1330_v55, %v1281_v16  ;;  %v431_v4 = vadd.f32 %v1294_v30, %v430_v56  ;;  %913 = vpow2.f32 %v836_v59  ;;  %v469_v8 = vmul.f32 %v1323_v50, %v468_v1 }
  0xcf   :  { %v1349_v19 = vadd.f32 1.0, %v908_v21  ;;  %v1351_v3 = vpop.eup %909  ;;  %vm512_vm12 = vweird.f32 %v1330_v55  ;;  %v557_v21 = vand.u32 2147483648, %v1300_v26  ;;  %vm1422_vm11 = vcmp.eq.f32.partialorder %v555_v9, 8.507059e+37 }
  0xd0   :  { %v508_v5 = vsub.f32 1.0, %v507_v32  ;;  %v547_v38 = vmul.f32 %v1351_v3, %v1300_v26  ;;  %v912_v29 = vpop.eup %911  ;;  %v470_v37 = vadd.f32 %v1323_v50, %v469_v8  ;;  %v435_v42 = vsel %vm1369_vm14, %v1294_v30, %v431_v4  ;;  %vm1396_vm2 = vmor %vm511_vm15, %vm512_vm12 }
  0xd1   :  { %v389_v15 = vpop.f32.mrf.mxu2  ;;  %915 = vrcp.f32 %v1349_v19  ;;  %v1389_v43 = vadd.f32 1.0, %v912_v29  ;;  %v440_v51 = vsel %vm1335_vm6, %v439_v57, %v435_v42  ;;  %vm552_vm7 = vweird.f32 %v1351_v3  ;;  %vm1431_vm6 = vmor %vm612_vm10, %vm613_vm8 }
  0xd2   :  { %v509_v17 = vmul.f32 %v1330_v55, %v508_v5  ;;  %v402_v27 = vpop.f32.mrf.mxu3  ;;  %v548_v40 = vsub.f32 1.0, %v547_v38  ;;  %917 = vpow2.f32 %v838_v11  ;;  %v474_v16 = vsel %vm1384_vm1, %v1323_v50, %v470_v37  ;;  %vm1442_vm12 = vmor %vm551_vm9, %vm552_vm7 }
  0xd3   :  { %919 = vrcp.f32 %v1389_v43  ;;  %v479_v50 = vsel %vm476_vm4, %v478_v44, %v474_v16  ;;  %v442_v1 = vmul.f32 %v440_v51, %v1243_v33  ;;  %v1440_v26 = vadd.f32 %v1233_v18, %v1326_v52  ;;  %vm1463_vm10 = vmor %vm652_vm0, %vm653_vm13 }
  0xd4   :  { %v510_v7 = vadd.f32 %v1330_v55, %v509_v17  ;;  %v549_v12 = vmul.f32 %v1351_v3, %v548_v40  ;;  %v914_v48 = vpop.eup %913  ;;  %v481_v0 = vmul.f32 %v479_v50, %v1248_v61  ;;  %v595_v60 = vand.u32 2147483647, %v1349_v19 }
  0xd5   :  { %v1419_v32 = vadd.f32 1.0, %v914_v48  ;;  %v615_v33 = vsel %vm1431_vm6, %v1210_v46, %v611_v23  ;;  %v558_v52 = vor.u32 1.1754944e-38, %v557_v21  ;;  %v597_v14 = vand.u32 2147483648, %v1349_v19 }
  0xd6   :  { %v514_v49 = vsel %vm1396_vm2, %v1330_v55, %v510_v7  ;;  %v550_v58 = vadd.f32 %v1351_v3, %v549_v12  ;;  %v482_v20 = vadd.f32 %v481_v0, %v442_v1  ;;  %v655_v27 = vsel %vm1463_vm10, %v1233_v18, %v1440_v26 }
  0xd7   :  { %v916_v56 = vpop.eup %915  ;;  %v519_v55 = vsel %vm516_vm5, %v518_v53, %v514_v49  ;;  %921 = vrcp.f32 %v1419_v32  ;;  %vm591_vm14 = vweird.f32 %v1349_v19  ;;  %vm1476_vm15 = vcmp.eq.f32.partialorder %v595_v60, 8.507059e+37 }
  0xd8   :  { %v587_v57 = vmul.f32 %v916_v56, %v1349_v19  ;;  %v918_v59 = vpop.eup %917  ;;  %v554_v8 = vsel %vm1442_vm12, %v1351_v3, %v550_v58  ;;  %v521_v38 = vmul.f32 %v519_v55, %v1262_v2  ;;  %vm592_vm8 = vweird.f32 %v916_v56 }
  0xd9   :  { %v1447_v11 = vadd.f32 1.0, %v918_v59  ;;  %v920_v61 = vpop.eup %919  ;;  %v637_v3 = vand.u32 2147483648, %v1389_v43  ;;  %v620_v2 = vsel %vm1404_vm3, %v1268_v10, %v615_v33  ;;  %vm593_vm13 = vmor %vm591_vm14, %vm592_vm8  ;;  %v598_v40 = vor.u32 1.1754944e-38, %v597_v14 }
  0xda   :  { %v588_v5 = vsub.f32 1.0, %v587_v57  ;;  %v627_v17 = vmul.f32 %v920_v61, %v1389_v43  ;;  %v522_v42 = vadd.f32 %v521_v38, %v482_v20  ;;  %v559_v10 = vsel %vm1422_vm11, %v558_v52, %v554_v8 }
  0xdb   :  { %923 = vrcp.f32 %v1447_v11  ;;  %v635_v54 = vand.u32 2147483647, %v1389_v43  ;;  %vm1485_vm0 = vcmp.eq.f32.partialorder %v656_v24, 8.507059e+37  ;;  %vm692_vm1 = vweird.f32 %v1181_v34 }
  0xdc   :  { %v589_v15 = vmul.f32 %v916_v56, %v588_v5  ;;  %v628_v37 = vsub.f32 1.0, %v627_v17  ;;  %vm632_vm2 = vweird.f32 %v920_v61  ;;  %vm631_vm3 = vweird.f32 %v1389_v43 }
  0xdd   :  { %v922_v39 = vpop.eup %921  ;;  %v638_v44 = vor.u32 1.1754944e-38, %v637_v3  ;;  %v561_v9 = vmul.f32 %v559_v10, %v1287_v22  ;;  %vm633_vm4 = vmor %vm631_vm3, %vm632_vm2  ;;  %v677_v49 = vand.u32 2147483648, %v1419_v32  ;;  %vm636_vm5 = vcmp.eq.f32.partialorder %v635_v54, 8.507059e+37 }
  0xde   :  { %v590_v29 = vadd.f32 %v916_v56, %v589_v15  ;;  %v629_v19 = vmul.f32 %v920_v61, %v628_v37  ;;  %v667_v7 = vmul.f32 %v922_v39, %v1419_v32  ;;  %v675_v51 = vand.u32 2147483647, %v1419_v32 }
  0xdf   :  { %v562_v53 = vadd.f32 %v561_v9, %v522_v42  ;;  %vm672_vm7 = vweird.f32 %v922_v39  ;;  %vm693_vm9 = vweird.f32 %v1274_v13  ;;  %vm671_vm11 = vweird.f32 %v1419_v32 }
  0xe0   :  { %v594_v16 = vsel %vm593_vm13, %v916_v56, %v590_v29  ;;  %v668_v12 = vsub.f32 1.0, %v667_v7  ;;  %v630_v48 = vadd.f32 %v920_v61, %v629_v19  ;;  %v691_v56 = vadd.f32 %v1274_v13, %v690_v6  ;;  %vm673_vm6 = vmor %vm671_vm11, %vm672_vm7 }
  0xe1   :  { %v599_v30 = vsel %vm1476_vm15, %v598_v40, %v594_v16  ;;  %v924_v24 = vpop.eup %923  ;;  %v717_v58 = vand.u32 2147483648, %v1447_v11  ;;  %v678_v21 = vor.u32 1.1754944e-38, %v677_v49  ;;  %v715_v62 = vand.u32 2147483647, %v1447_v11  ;;  %vm694_vm10 = vmor %vm692_vm1, %vm693_vm9 }
  0xe2   :  { %v601_v47 = vmul.f32 %v599_v30, %v1344_v63  ;;  %v707_v43 = vmul.f32 %v924_v24, %v1447_v11  ;;  %v669_v50 = vmul.f32 %v922_v39, %v668_v12  ;;  %v634_v35 = vsel %vm633_vm4, %v920_v61, %v630_v48 }
  0xe3   :  { %v639_v23 = vsel %vm636_vm5, %v638_v44, %v634_v35  ;;  %vm712_vm12 = vweird.f32 %v924_v24  ;;  %v660_v59 = vsel %vm1485_vm0, %v1308_v41, %v655_v27  ;;  %vm676_vm8 = vcmp.eq.f32.partialorder %v675_v51, 8.507059e+37 }
  0xe4   :  { %v708_v28 = vsub.f32 1.0, %v707_v43  ;;  %v602_v22 = vadd.f32 %v601_v47, %v562_v53  ;;  %v670_v63 = vadd.f32 %v922_v39, %v669_v50  ;;  %v641_v57 = vmul.f32 %v639_v23, %v620_v2 }
  0xe5   :  { %v695_v1 = vsel %vm694_vm10, %v1274_v13, %v691_v56  ;;  %vm711_vm14 = vweird.f32 %v1447_v11  ;;  %v699_v5 = vor.u32 1.1754944e-38, %v698_v25  ;;  %v718_v60 = vor.u32 1.1754944e-38, %v717_v58 }
  0xe6   :  { %v709_v55 = vmul.f32 %v924_v24, %v708_v28  ;;  %v674_v36 = vsel %vm673_vm6, %v922_v39, %v670_v63  ;;  %v642_v26 = vadd.f32 %v641_v57, %v602_v22  ;;  %vm713_vm15 = vmor %vm711_vm14, %vm712_vm12  ;;  %vm697_vm13 = vcmp.eq.f32.partialorder %v696_v45, 8.507059e+37 }
  0xe7   :  { %v679_v32 = vsel %vm676_vm8, %v678_v21, %v674_v36  ;;  %vm716_vm0 = vcmp.eq.f32.partialorder %v715_v62, 8.507059e+37  ;;  %v700_v61 = vsel %vm697_vm13, %v699_v5, %v695_v1 }
  0xe8   :  { %v710_v0 = vadd.f32 %v924_v24, %v709_v55  ;;  %v681_v4 = vmul.f32 %v679_v32, %v660_v59 }
  0xea   :  { %v714_v41 = vsel %vm713_vm15, %v924_v24, %v710_v0  ;;  %v682_v33 = vadd.f32 %v681_v4, %v642_v26 }
  0xeb   :  { %v719_v8 = vsel %vm716_vm0, %v718_v60, %v714_v41 }
  0xec   :  { %v721_v52 = vmul.f32 %v719_v8, %v700_v61 }
  0xee   :  { %v722_v13 = vadd.f32 %v721_v52, %v682_v33 }
  0xf0   :  { %v723_v11 = vmul.f32 0.35355338, %v722_v13 }
  0xf2   :  { %724 = vst [vmem:[#allocation8] sm:$0xff] %v723_v11 }
  0xf3   :  { %735 = dma.vmem_to_hbm [thread:$0]  %s731_s2, 128, %s733_s30, [#allocation4]  }
  0xf4   :  { %1025 = dma.done.wait [#allocation4], 128  }
  0xf5   :  { %1026 = vsyncadd [#allocation4], 4294967168 }
  0xf6   :  { %740 = vsyncpa [#allocation3], 1 }
  0xf7   :  { %741 = vsyncpa [#allocation6], 1 }
  0xf8   :  { %742 = vsyncpa [#allocation4], 1 }

</bundles_post_ra>
